<compile_context>
chip_gen: v7x
topology: tpu7x:2x2x1
jax: 0.10.0
libtpu: 0.0.40
codegen_flags: <defaults>
</compile_context>

<pallas_src>
import jax
import jax.numpy as jnp
from jax.experimental import pallas as pl
from jax.experimental.pallas import tpu as pltpu

IN_DIM = 28 * 28          # 784
HID = 128                 # hidden width padded 64 -> 128 (lane-dense)
NCLS = 10                 # real classes
NCLS_PAD = 128            # padded class dim (lane-dense output)
NEG_BIG = -1e30           # padded-class bias (kills max / logsumexp impact)

MAX_TILE_B = 1024         # measured ~86% of HBM roofline at 1024
MIN_TILE_B = 256          # multiple of MXU M on all generations


def mlp_kernel(x_ref,
               w1_ref, b1_ref,
               w2_ref, b2_ref,
               w3_ref, b3_ref,
               w4_ref, b4_ref,
               o_ref):
    # In-kernel bf16 cast of x (f32 in HBM -> bf16 MXU operand).
    x = x_ref[...].astype(jnp.bfloat16)
    # fc1 + relu  (bf16 operands on the MXU, f32 accumulation)
    h = jnp.dot(x, w1_ref[...], preferred_element_type=jnp.float32)
    h = jnp.maximum(h + b1_ref[...], 0.0)
    # fc2 + relu
    h = jnp.dot(h.astype(jnp.bfloat16), w2_ref[...],
                preferred_element_type=jnp.float32)
    h = jnp.maximum(h + b2_ref[...], 0.0)
    # fc3 + relu
    h = jnp.dot(h.astype(jnp.bfloat16), w3_ref[...],
                preferred_element_type=jnp.float32)
    h = jnp.maximum(h + b3_ref[...], 0.0)
    # fc4 (no activation); padded class columns get bias -1e30
    logits = jnp.dot(h.astype(jnp.bfloat16), w4_ref[...],
                     preferred_element_type=jnp.float32)
    logits = logits + b4_ref[...]
    # log_softmax over the (padded) class axis, f32, numerically stabilized.
    # Padded columns sit at ~-1e30: they never win the max and exp() -> 0.
    m = jnp.max(logits, axis=-1, keepdims=True)
    shifted = logits - m
    lse = jnp.log(jnp.sum(jnp.exp(shifted), axis=-1, keepdims=True))
    o_ref[...] = shifted - lse


def _choose_tile_b(B):
    """Tile multiple of 256, <= MAX_TILE_B, with >= 2 tiles when B allows
    (keeps both v7x TensorCores busy on the only parallel axis)."""
    if B <= MIN_TILE_B:
        return MIN_TILE_B
    half = pl.cdiv(B, 2)
    half_rounded = pl.cdiv(half, MIN_TILE_B) * MIN_TILE_B
    return min(MAX_TILE_B, half_rounded)


def _pad_to(a, shape, fill=0.0):
    pads = [(0, t - s) for s, t in zip(a.shape, shape)]
    return jnp.pad(a, pads, constant_values=fill)


def _prep_weights(params):
    """PyTorch-layout (out, in) params -> padded, transposed kernel operands."""
    # fc1: (64, 784) -> W.T (784, 64) -> pad out-cols to (784, 128)
    w1 = _pad_to(params["w1"].T, (IN_DIM, HID)).astype(jnp.bfloat16)
    b1 = _pad_to(params["b1"], (HID,)).astype(jnp.float32).reshape(1, HID)
    # fc2/fc3: (64, 64) -> (64, 64) -> pad to (128, 128)
    w2 = _pad_to(params["w2"].T, (HID, HID)).astype(jnp.bfloat16)
    b2 = _pad_to(params["b2"], (HID,)).astype(jnp.float32).reshape(1, HID)
    w3 = _pad_to(params["w3"].T, (HID, HID)).astype(jnp.bfloat16)
    b3 = _pad_to(params["b3"], (HID,)).astype(jnp.float32).reshape(1, HID)
    # fc4: (10, 64) -> W.T (64, 10) -> pad to (128, 128); padded out-cols are 0
    w4 = _pad_to(params["w4"].T, (HID, NCLS_PAD)).astype(jnp.bfloat16)
    # padded class biases = -1e30 so they don't affect max / logsumexp
    b4 = jnp.concatenate(
        [params["b4"].astype(jnp.float32),
         jnp.full((NCLS_PAD - NCLS,), NEG_BIG, jnp.float32)]).reshape(1, NCLS_PAD)
    return [w1, b1, w2, b2, w3, b3, w4, b4]


def mlp_forward(x, params):
    """x: (B, 784) float32. params: PyTorch-layout weights/biases (f32)."""
    B = x.shape[0]
    tile_b = _choose_tile_b(B)
    n_tiles = pl.cdiv(B, tile_b)
    B_pad = n_tiles * tile_b
    if B_pad != B:
        x = jnp.pad(x, ((0, B_pad - B), (0, 0)))
    x = x.astype(jnp.float32)   # no wrapper-side bf16 cast (done in-kernel)

    wb = _prep_weights(params)
    args = [x] + wb

    in_specs = [pl.BlockSpec((tile_b, IN_DIM), lambda i: (i, 0))]
    for a in wb:
        # constant index_map -> weights/biases stay VMEM-resident across grid
        in_specs.append(pl.BlockSpec(a.shape, lambda i: (0, 0)))

    flops = 2 * B_pad * (IN_DIM * HID + HID * HID + HID * HID + HID * NCLS_PAD)
    bytes_accessed = (B_pad * IN_DIM * 4          # x (f32 in HBM)
                      + B_pad * NCLS_PAD * 4      # padded output
                      + sum(int(a.size) * a.dtype.itemsize for a in wb))

    out = pl.pallas_call(
        mlp_kernel,
        out_shape=jax.ShapeDtypeStruct((B_pad, NCLS_PAD), jnp.float32),
        grid=(n_tiles,),
        in_specs=in_specs,
        out_specs=pl.BlockSpec((tile_b, NCLS_PAD), lambda i: (i, 0)),
        compiler_params=pltpu.CompilerParams(
            dimension_semantics=("parallel",)),
        cost_estimate=pl.CostEstimate(
            flops=flops,
            transcendentals=B_pad * (NCLS_PAD + 1),   # exp per col + log
            bytes_accessed=bytes_accessed),
    )(*args)
    # Drop batch padding and the 118 padded class columns.
    return out[:B, :NCLS]


def mlp_reference(x, params):
    """Pure-JAX f32 reference of the PyTorch forward."""
    h = x
    for li in (1, 2, 3):
        h = jnp.maximum(h @ params[f"w{li}"].T + params[f"b{li}"], 0.0)
    logits = h @ params["w4"].T + params["b4"]
    return jax.nn.log_softmax(logits, axis=1)


def init_params(key):
    """Deterministic init matching nn.Linear shapes (weight: (out, in))."""
    dims = [(64, IN_DIM), (64, 64), (64, 64), (10, 64)]
    params = {}
    for i, (out_f, in_f) in enumerate(dims, start=1):
        key, kw, kb = jax.random.split(key, 3)
        bound = 1.0 / jnp.sqrt(in_f)
        params[f"w{i}"] = jax.random.uniform(
            kw, (out_f, in_f), jnp.float32, minval=-bound, maxval=bound)
        params[f"b{i}"] = jax.random.uniform(
            kb, (out_f,), jnp.float32, minval=-bound, maxval=bound)
    return params


if __name__ == "__main__":
    key = jax.random.PRNGKey(0)
    key, kx1, kx2 = jax.random.split(key, 3)
    params = init_params(key)

    # small batch (padded up to one 256-row tile internally)
    x_small = jax.random.normal(kx1, (8, IN_DIM), jnp.float32)
    out_small = mlp_forward(x_small, params)
    jax.block_until_ready(out_small)

    # larger batch: tile = 256 -> 2 grid steps (both v7x cores busy)
    x_big = jax.random.normal(kx2, (512, IN_DIM), jnp.float32)
    out_big = mlp_forward(x_big, params)
    jax.block_until_ready(out_big)

    assert out_small.shape == (8, NCLS)
    assert out_big.shape == (512, NCLS)

    # log-probs should exp-sum to ~1 per row
    for out in (out_small, out_big):
        row_sums = jnp.sum(jnp.exp(out), axis=1)
        assert bool(jnp.all(jnp.abs(row_sums - 1.0) < 1e-3))

    # loose tolerance vs f32 reference (bf16 operand cast shifts logits slightly)
    ref = mlp_reference(x_big, params)
    assert bool(jnp.max(jnp.abs(out_big - ref)) < 0.1)

    print("KERNEL_OK")
</pallas_src>

<mosaic_0001>
module attributes {stable_mosaic.version = 11 : i64} {
  func.func @mlp_kernel(%arg0: i32, %arg1: memref<256x784xf32, #tpu.memory_space<vmem>>, %arg2: memref<784x128xbf16, #tpu.memory_space<vmem>>, %arg3: memref<1x128xf32, #tpu.memory_space<vmem>>, %arg4: memref<128x128xbf16, #tpu.memory_space<vmem>>, %arg5: memref<1x128xf32, #tpu.memory_space<vmem>>, %arg6: memref<128x128xbf16, #tpu.memory_space<vmem>>, %arg7: memref<1x128xf32, #tpu.memory_space<vmem>>, %arg8: memref<128x128xbf16, #tpu.memory_space<vmem>>, %arg9: memref<1x128xf32, #tpu.memory_space<vmem>>, %arg10: memref<256x128xf32, #tpu.memory_space<vmem>>) attributes {dimension_semantics = [#tpu.dimension_semantics<parallel>], iteration_bounds = array<i64: 1>, scalar_prefetch = 0 : i64, scratch_operands = 0 : i64, tpu.core_type = #tpu.core_type<tc>, window_params = [{transform_indices = @transform_0, window_bounds = array<i64: 256, 784>}, {pipeline_mode = #tpu.pipeline_mode<synchronous>, transform_indices = @transform_1, window_bounds = array<i64: 784, 128>}, {pipeline_mode = #tpu.pipeline_mode<synchronous>, transform_indices = @transform_2, window_bounds = array<i64: 1, 128>}, {pipeline_mode = #tpu.pipeline_mode<synchronous>, transform_indices = @transform_3, window_bounds = array<i64: 128, 128>}, {pipeline_mode = #tpu.pipeline_mode<synchronous>, transform_indices = @transform_4, window_bounds = array<i64: 1, 128>}, {pipeline_mode = #tpu.pipeline_mode<synchronous>, transform_indices = @transform_5, window_bounds = array<i64: 128, 128>}, {pipeline_mode = #tpu.pipeline_mode<synchronous>, transform_indices = @transform_6, window_bounds = array<i64: 1, 128>}, {pipeline_mode = #tpu.pipeline_mode<synchronous>, transform_indices = @transform_7, window_bounds = array<i64: 128, 128>}, {pipeline_mode = #tpu.pipeline_mode<synchronous>, transform_indices = @transform_8, window_bounds = array<i64: 1, 128>}, {transform_indices = @transform_9, window_bounds = array<i64: 256, 128>}]} {
    %c0 = arith.constant 0 : index
    %c0_0 = arith.constant 0 : index
    %0 = vector.load %arg1[%c0, %c0_0] : memref<256x784xf32, #tpu.memory_space<vmem>>, vector<256x784xf32>
    %1 = arith.truncf %0 : vector<256x784xf32> to vector<256x784xbf16>
    %c0_1 = arith.constant 0 : index
    %c0_2 = arith.constant 0 : index
    %2 = vector.load %arg2[%c0_1, %c0_2] : memref<784x128xbf16, #tpu.memory_space<vmem>>, vector<784x128xbf16>
    %cst = arith.constant dense<0.000000e+00> : vector<256x128xf32>
    %3 = tpu.matmul %1, %2, %cst {dimension_numbers = #tpu.dot_dimension_numbers<[1], [0], [0], [1], [0, 0, 1, 1], [], []>} : vector<256x784xbf16>, vector<784x128xbf16>, vector<256x128xf32> -> vector<256x128xf32>
    %c0_3 = arith.constant 0 : index
    %c0_4 = arith.constant 0 : index
    %4 = vector.load %arg3[%c0_3, %c0_4] : memref<1x128xf32, #tpu.memory_space<vmem>>, vector<1x128xf32>
    %5 = vector.broadcast %4 : vector<1x128xf32> to vector<256x128xf32>
    %6 = arith.addf %3, %5 : vector<256x128xf32>
    %cst_5 = arith.constant 0.000000e+00 : f32
    %7 = vector.broadcast %cst_5 : f32 to vector<256x128xf32>
    %8 = arith.maximumf %6, %7 : vector<256x128xf32>
    %9 = arith.truncf %8 : vector<256x128xf32> to vector<256x128xbf16>
    %c0_6 = arith.constant 0 : index
    %c0_7 = arith.constant 0 : index
    %10 = vector.load %arg4[%c0_6, %c0_7] : memref<128x128xbf16, #tpu.memory_space<vmem>>, vector<128x128xbf16>
    %cst_8 = arith.constant dense<0.000000e+00> : vector<256x128xf32>
    %11 = tpu.matmul %9, %10, %cst_8 {dimension_numbers = #tpu.dot_dimension_numbers<[1], [0], [0], [1], [0, 0, 1, 1], [], []>} : vector<256x128xbf16>, vector<128x128xbf16>, vector<256x128xf32> -> vector<256x128xf32>
    %c0_9 = arith.constant 0 : index
    %c0_10 = arith.constant 0 : index
    %12 = vector.load %arg5[%c0_9, %c0_10] : memref<1x128xf32, #tpu.memory_space<vmem>>, vector<1x128xf32>
    %13 = vector.broadcast %12 : vector<1x128xf32> to vector<256x128xf32>
    %14 = arith.addf %11, %13 : vector<256x128xf32>
    %cst_11 = arith.constant 0.000000e+00 : f32
    %15 = vector.broadcast %cst_11 : f32 to vector<256x128xf32>
    %16 = arith.maximumf %14, %15 : vector<256x128xf32>
    %17 = arith.truncf %16 : vector<256x128xf32> to vector<256x128xbf16>
    %c0_12 = arith.constant 0 : index
    %c0_13 = arith.constant 0 : index
    %18 = vector.load %arg6[%c0_12, %c0_13] : memref<128x128xbf16, #tpu.memory_space<vmem>>, vector<128x128xbf16>
    %cst_14 = arith.constant dense<0.000000e+00> : vector<256x128xf32>
    %19 = tpu.matmul %17, %18, %cst_14 {dimension_numbers = #tpu.dot_dimension_numbers<[1], [0], [0], [1], [0, 0, 1, 1], [], []>} : vector<256x128xbf16>, vector<128x128xbf16>, vector<256x128xf32> -> vector<256x128xf32>
    %c0_15 = arith.constant 0 : index
    %c0_16 = arith.constant 0 : index
    %20 = vector.load %arg7[%c0_15, %c0_16] : memref<1x128xf32, #tpu.memory_space<vmem>>, vector<1x128xf32>
    %21 = vector.broadcast %20 : vector<1x128xf32> to vector<256x128xf32>
    %22 = arith.addf %19, %21 : vector<256x128xf32>
    %cst_17 = arith.constant 0.000000e+00 : f32
    %23 = vector.broadcast %cst_17 : f32 to vector<256x128xf32>
    %24 = arith.maximumf %22, %23 : vector<256x128xf32>
    %25 = arith.truncf %24 : vector<256x128xf32> to vector<256x128xbf16>
    %c0_18 = arith.constant 0 : index
    %c0_19 = arith.constant 0 : index
    %26 = vector.load %arg8[%c0_18, %c0_19] : memref<128x128xbf16, #tpu.memory_space<vmem>>, vector<128x128xbf16>
    %cst_20 = arith.constant dense<0.000000e+00> : vector<256x128xf32>
    %27 = tpu.matmul %25, %26, %cst_20 {dimension_numbers = #tpu.dot_dimension_numbers<[1], [0], [0], [1], [0, 0, 1, 1], [], []>} : vector<256x128xbf16>, vector<128x128xbf16>, vector<256x128xf32> -> vector<256x128xf32>
    %c0_21 = arith.constant 0 : index
    %c0_22 = arith.constant 0 : index
    %28 = vector.load %arg9[%c0_21, %c0_22] : memref<1x128xf32, #tpu.memory_space<vmem>>, vector<1x128xf32>
    %29 = vector.broadcast %28 : vector<1x128xf32> to vector<256x128xf32>
    %30 = arith.addf %27, %29 : vector<256x128xf32>
    %cst_23 = arith.constant dense<0xFF800000> : vector<256xf32>
    %31 = vector.multi_reduction <maximumf>, %30, %cst_23 [1] : vector<256x128xf32> to vector<256xf32>
    %32 = vector.shape_cast %31 : vector<256xf32> to vector<256x1xf32>
    %33 = vector.broadcast %32 : vector<256x1xf32> to vector<256x128xf32>
    %34 = arith.subf %30, %33 : vector<256x128xf32>
    %35 = math.exp %34 : vector<256x128xf32>
    %cst_24 = arith.constant dense<0.000000e+00> : vector<256xf32>
    %36 = vector.multi_reduction <add>, %35, %cst_24 [1] : vector<256x128xf32> to vector<256xf32>
    %37 = vector.shape_cast %36 : vector<256xf32> to vector<256x1xf32>
    %38 = math.log %37 : vector<256x1xf32>
    %39 = vector.broadcast %38 : vector<256x1xf32> to vector<256x128xf32>
    %40 = arith.subf %34, %39 : vector<256x128xf32>
    %c0_25 = arith.constant 0 : index
    %c0_26 = arith.constant 0 : index
    %41 = vector.load %arg10[%c0_25, %c0_26] : memref<256x128xf32, #tpu.memory_space<vmem>>, vector<256x128xf32>
    tpu.vector_store %arg10[%c0_25, %c0_26], %40 {strides = array<i32>} : memref<256x128xf32, #tpu.memory_space<vmem>>, vector<256x128xf32>,
    return
  }
  func.func @transform_0(%arg0: i32) -> (i32, i32) {
    %c0_i32 = arith.constant 0 : i32
    %c0_i32_0 = arith.constant 0 : i32
    return %arg0, %c0_i32 : i32, i32
  }
  func.func @transform_1(%arg0: i32) -> (i32, i32) {
    %c0_i32 = arith.constant 0 : i32
    %c0_i32_0 = arith.constant 0 : i32
    %c0_i32_1 = arith.constant 0 : i32
    return %c0_i32, %c0_i32_0 : i32, i32
  }
  func.func @transform_2(%arg0: i32) -> (i32, i32) {
    %c0_i32 = arith.constant 0 : i32
    %c0_i32_0 = arith.constant 0 : i32
    %c0_i32_1 = arith.constant 0 : i32
    return %c0_i32, %c0_i32_0 : i32, i32
  }
  func.func @transform_3(%arg0: i32) -> (i32, i32) {
    %c0_i32 = arith.constant 0 : i32
    %c0_i32_0 = arith.constant 0 : i32
    %c0_i32_1 = arith.constant 0 : i32
    return %c0_i32, %c0_i32_0 : i32, i32
  }
  func.func @transform_4(%arg0: i32) -> (i32, i32) {
    %c0_i32 = arith.constant 0 : i32
    %c0_i32_0 = arith.constant 0 : i32
    %c0_i32_1 = arith.constant 0 : i32
    return %c0_i32, %c0_i32_0 : i32, i32
  }
  func.func @transform_5(%arg0: i32) -> (i32, i32) {
    %c0_i32 = arith.constant 0 : i32
    %c0_i32_0 = arith.constant 0 : i32
    %c0_i32_1 = arith.constant 0 : i32
    return %c0_i32, %c0_i32_0 : i32, i32
  }
  func.func @transform_6(%arg0: i32) -> (i32, i32) {
    %c0_i32 = arith.constant 0 : i32
    %c0_i32_0 = arith.constant 0 : i32
    %c0_i32_1 = arith.constant 0 : i32
    return %c0_i32, %c0_i32_0 : i32, i32
  }
  func.func @transform_7(%arg0: i32) -> (i32, i32) {
    %c0_i32 = arith.constant 0 : i32
    %c0_i32_0 = arith.constant 0 : i32
    %c0_i32_1 = arith.constant 0 : i32
    return %c0_i32, %c0_i32_0 : i32, i32
  }
  func.func @transform_8(%arg0: i32) -> (i32, i32) {
    %c0_i32 = arith.constant 0 : i32
    %c0_i32_0 = arith.constant 0 : i32
    %c0_i32_1 = arith.constant 0 : i32
    return %c0_i32, %c0_i32_0 : i32, i32
  }
  func.func @transform_9(%arg0: i32) -> (i32, i32) {
    %c0_i32 = arith.constant 0 : i32
    %c0_i32_0 = arith.constant 0 : i32
    return %arg0, %c0_i32 : i32, i32
  }
}

</mosaic_0001>

<bundles_post_ra>
// kernel: tpu_custom_call.1
= control target key start
LH: loop header
LB: loop body
LE: loop exit
PB: predicated region body
PF: predicated region fallthrough
CT: control target
= control target key end

     0   :  { %s5126_s0 = inlined_call_operand.vmem [shape: f32[256,784], index: 0, kind: input, shape index: {}]   ;;  %s5127_s1 = inlined_call_operand.vmem [shape: bf16[784,128], index: 1, kind: input, shape index: {}]   ;;  %s5128_s2 = inlined_call_operand.vmem [shape: f32[1,128], index: 2, kind: input, shape index: {}]   ;;  %s5129_s3 = inlined_call_operand.vmem [shape: bf16[128,128], index: 3, kind: input, shape index: {}]   ;;  %s5130_s4 = inlined_call_operand.vmem [shape: f32[1,128], index: 4, kind: input, shape index: {}]   ;;  %s5131_s5 = inlined_call_operand.vmem [shape: bf16[128,128], index: 5, kind: input, shape index: {}]   ;;  %s5132_s6 = inlined_call_operand.vmem [shape: f32[1,128], index: 6, kind: input, shape index: {}]   ;;  %s5133_s7 = inlined_call_operand.vmem [shape: bf16[128,128], index: 7, kind: input, shape index: {}]   ;;  %s5134_s8 = inlined_call_operand.vmem [shape: f32[1,128], index: 8, kind: input, shape index: {}]   ;;  %s5135_s9 = inlined_call_operand.hbm [shape: f32[256,128], index: 9, kind: output, shape index: {}]  }
   0x1   :  { %v3369_v0 = vld [vmem:[%s5127_s1 + $0x40] sm:$0xff]   ;;  %v3373_v4 = vld [vmem:[%s5127_s1 + $0x48] sm:$0xff]   ;;  %v3377_v8 = vld [vmem:[%s5127_s1 + $0x50] sm:$0xff]  }
   0x2   :  { %v3370_v1 = vld [vmem:[%s5127_s1] sm:$0xff]   ;;  %2763 = vmatprep.subr.bf16.mxu0 %v3369_v0  ;;  %v3374_v5 = vld [vmem:[%s5127_s1 + $0x8] sm:$0xff]   ;;  %v3378_v9 = vld [vmem:[%s5127_s1 + $0x10] sm:$0xff]  }
   0x3   :  { %v3371_v2 = vld [vmem:[%s5127_s1 + $0xc0] sm:$0xff]   ;;  %2764 = vmatpush3.bf16.msra.mxu0 %v3370_v1  ;;  %v3375_v6 = vld [vmem:[%s5127_s1 + $0xc8] sm:$0xff]   ;;  %v3379_v10 = vld [vmem:[%s5127_s1 + $0xd0] sm:$0xff]  }
   0x4   :  { %v3372_v3 = vld [vmem:[%s5127_s1 + $0x80] sm:$0xff]   ;;  %2875 = vmatprep.subr.bf16.mxu1 %v3371_v2  ;;  %2765 = vmatprep.subr.bf16.mxu0 %v3373_v4  ;;  %v3376_v7 = vld [vmem:[%s5127_s1 + $0x88] sm:$0xff]   ;;  %v3380_v11 = vld [vmem:[%s5127_s1 + $0x90] sm:$0xff]  }
   0x5   :  { %2876 = vmatpush3.bf16.msra.mxu1 %v3372_v3  ;;  %v3381_v12 = vld [vmem:[%s5127_s1 + $0x58] sm:$0xff]   ;;  %v3385_v16 = vld [vmem:[%s5127_s1 + $0x60] sm:$0xff]   ;;  %v3389_v20 = vld [vmem:[%s5127_s1 + $0x68] sm:$0xff]  }
   0x6   :  { %2877 = vmatprep.subr.bf16.mxu1 %v3375_v6  ;;  %v3382_v13 = vld [vmem:[%s5127_s1 + $0x18] sm:$0xff]   ;;  %v3386_v17 = vld [vmem:[%s5127_s1 + $0x20] sm:$0xff]   ;;  %v3390_v21 = vld [vmem:[%s5127_s1 + $0x28] sm:$0xff]  }
   0x7   :  { %2766 = vmatpush3.bf16.msra.mxu0 %v3374_v5  ;;  %v3383_v14 = vld [vmem:[%s5127_s1 + $0xd8] sm:$0xff]   ;;  %v3387_v18 = vld [vmem:[%s5127_s1 + $0xe0] sm:$0xff]   ;;  %v3391_v22 = vld [vmem:[%s5127_s1 + $0xe8] sm:$0xff]  }
   0x8   :  { %2767 = vmatprep.subr.bf16.mxu0 %v3377_v8  ;;  %v3384_v15 = vld [vmem:[%s5127_s1 + $0x98] sm:$0xff]   ;;  %v3388_v19 = vld [vmem:[%s5127_s1 + $0xa0] sm:$0xff]   ;;  %v3392_v23 = vld [vmem:[%s5127_s1 + $0xa8] sm:$0xff]  }
   0x9   :  { %2878 = vmatpush3.bf16.msra.mxu1 %v3376_v7  ;;  %v3393_v24 = vld [vmem:[%s5127_s1 + $0x70] sm:$0xff]   ;;  %v3397_v28 = vld [vmem:[%s5127_s1 + $0x78] sm:$0xff]   ;;  %v35_v31 = vld [vmem:[%s5126_s0 + $0x8] sm:$0xff] }
   0xa   :  { %2879 = vmatprep.subr.bf16.mxu1 %v3379_v10  ;;  %v3394_v25 = vld [vmem:[%s5127_s1 + $0x30] sm:$0xff]   ;;  %v3398_v29 = vld [vmem:[%s5127_s1 + $0x38] sm:$0xff]   ;;  %v42_v32 = vld [vmem:[%s5126_s0 + $0x40] sm:$0xff] }
   0xb   :  { %2768 = vmatpush3.bf16.msra.mxu0 %v3378_v9  ;;  %v3395_v26 = vld [vmem:[%s5127_s1 + $0xf0] sm:$0xff]   ;;  %v3399_v30 = vld [vmem:[%s5127_s1 + $0xf8] sm:$0xff]   ;;  %v259_v33 = vpack.c.bf16 %v42_v32, %v35_v31  ;;  %v34_v35 = vld [vmem:[%s5126_s0] sm:$0xff] }
   0xc   :  { %2769 = vmatprep.subr.bf16.mxu0 %v3381_v12  ;;  %v3396_v27 = vld [vmem:[%s5127_s1 + $0xb0] sm:$0xff]   ;;  %v3400_v34 = vld [vmem:[%s5127_s1 + $0xb8] sm:$0xff]   ;;  %v3401_v38 = vld [vmem:[%s5127_s1 + $0x140] sm:$0xff]  }
   0xd   :  { %2880 = vmatpush3.bf16.msra.mxu1 %v3380_v11  ;;  %v41_v36 = vld [vmem:[%s5126_s0 + $0x38] sm:$0xff]  ;;  %850 = vmatprep.mubr.bf16.mxu0 %v259_v33  ;;  %v44_v40 = vld [vmem:[%s5126_s0 + $0x50] sm:$0xff]  ;;  %v3402_v42 = vld [vmem:[%s5127_s1 + $0x100] sm:$0xff]  }
   0xe   :  { %2881 = vmatprep.subr.bf16.mxu1 %v3383_v14  ;;  %v258_v37 = vpack.c.bf16 %v41_v36, %v34_v35  ;;  %v37_v39 = vld [vmem:[%s5126_s0 + $0x18] sm:$0xff]  ;;  %v36_v43 = vld [vmem:[%s5126_s0 + $0x10] sm:$0xff]  ;;  %v43_v44 = vld [vmem:[%s5126_s0 + $0x48] sm:$0xff] }
   0xf   :  { %2770 = vmatpush3.bf16.msra.mxu0 %v3382_v13  ;;  %v261_v41 = vpack.c.bf16 %v44_v40, %v37_v39  ;;  %v49_v45 = vld [vmem:[%s5126_s0 + $0x78] sm:$0xff]  ;;  %v260_v46 = vpack.c.bf16 %v43_v44, %v36_v43  ;;  %v56_v47 = vld [vmem:[%s5126_s0 + $0xb0] sm:$0xff]  ;;  %v55_v49 = vld [vmem:[%s5126_s0 + $0xa8] sm:$0xff] }
  0x10   :  { %2771 = vmatprep.subr.bf16.mxu0 %v3385_v16  ;;  %v48_v48 = vld [vmem:[%s5126_s0 + $0x70] sm:$0xff]  ;;  %v266_v50 = vpack.c.bf16 %v56_v47, %v49_v45  ;;  %v51_v51 = vld [vmem:[%s5126_s0 + $0x88] sm:$0xff]  ;;  %v58_v52 = vld [vmem:[%s5126_s0 + $0xc0] sm:$0xff] }
  0x11   :  { %2882 = vmatpush3.bf16.msra.mxu1 %v3384_v15  ;;  %1011 = vmatprep.mubr.bf16.mxu1 %v261_v41  ;;  %v268_v53 = vpack.c.bf16 %v58_v52, %v51_v51  ;;  %v63_v54 = vld [vmem:[%s5126_s0 + $0xe8] sm:$0xff]  ;;  %v70_v55 = vld [vmem:[%s5126_s0 + $0x120] sm:$0xff]  ;;  %v265_v56 = vpack.c.bf16 %v55_v49, %v48_v48  ;;  %v57_v58 = vld [vmem:[%s5126_s0 + $0xb8] sm:$0xff] }
  0x12   :  { %2883 = vmatprep.subr.bf16.mxu1 %v3387_v18  ;;  %v50_v57 = vld [vmem:[%s5126_s0 + $0x80] sm:$0xff]  ;;  %v273_v59 = vpack.c.bf16 %v70_v55, %v63_v54  ;;  %v3403_v60 = vld [vmem:[%s5127_s1 + $0x148] sm:$0xff]   ;;  %v65_v61 = vld [vmem:[%s5126_s0 + $0xf8] sm:$0xff] }
  0x13   :  { %2772 = vmatpush3.bf16.msra.mxu0 %v3386_v17  ;;  %v72_v62 = vld [vmem:[%s5126_s0 + $0x130] sm:$0xff]  ;;  %v267_v63 = vpack.c.bf16 %v57_v58, %v50_v57  ;;  %v3404_v0 = vld [vmem:[%s5127_s1 + $0x108] sm:$0xff]   ;;  %v62_v2 = vld [vmem:[%s5126_s0 + $0xe0] sm:$0xff] }
  0x14   :  { %2773 = vmatprep.subr.bf16.mxu0 %v3389_v20  ;;  %v275_v1 = vpack.c.bf16 %v72_v62, %v65_v61  ;;  %v69_v3 = vld [vmem:[%s5126_s0 + $0x118] sm:$0xff]  ;;  %v84_v5 = vld [vmem:[%s5126_s0 + $0x190] sm:$0xff]  ;;  %v71_v7 = vld [vmem:[%s5126_s0 + $0x128] sm:$0xff] }
  0x15   :  { %2884 = vmatpush3.bf16.msra.mxu1 %v3388_v19  ;;  %v77_v4 = vld [vmem:[%s5126_s0 + $0x158] sm:$0xff]  ;;  %v64_v6 = vld [vmem:[%s5126_s0 + $0xf0] sm:$0xff]  ;;  %v272_v8 = vpack.c.bf16 %v69_v3, %v62_v2  ;;  %v79_v11 = vld [vmem:[%s5126_s0 + $0x168] sm:$0xff] }
  0x16   :  { %2885 = vmatprep.subr.bf16.mxu1 %v3391_v22  ;;  %v3405_v9 = vld [vmem:[%s5127_s1 + $0x150] sm:$0xff]   ;;  %v280_v10 = vpack.c.bf16 %v84_v5, %v77_v4  ;;  %v86_v12 = vld [vmem:[%s5126_s0 + $0x1a0] sm:$0xff]  ;;  %v274_v14 = vpack.c.bf16 %v71_v7, %v64_v6  ;;  %v83_v17 = vld [vmem:[%s5126_s0 + $0x188] sm:$0xff] }
  0x17   :  { %2774 = vmatpush3.bf16.msra.mxu0 %v3390_v21  ;;  %v3406_v13 = vld [vmem:[%s5127_s1 + $0x110] sm:$0xff]   ;;  %v282_v15 = vpack.c.bf16 %v86_v12, %v79_v11  ;;  %v78_v18 = vld [vmem:[%s5126_s0 + $0x160] sm:$0xff]  ;;  %v91_v19 = vld [vmem:[%s5126_s0 + $0x1c8] sm:$0xff] }
  0x18   :  { %2775 = vmatprep.subr.bf16.mxu0 %v3393_v24  ;;  %v76_v16 = vld [vmem:[%s5126_s0 + $0x150] sm:$0xff]  ;;  %v98_v20 = vld [vmem:[%s5126_s0 + $0x200] sm:$0xff]  ;;  %v85_v21 = vld [vmem:[%s5126_s0 + $0x198] sm:$0xff] }
  0x19   :  { %2886 = vmatpush3.bf16.msra.mxu1 %v3392_v23  ;;  %v279_v22 = vpack.c.bf16 %v83_v17, %v76_v16  ;;  %v93_v23 = vld [vmem:[%s5126_s0 + $0x1d8] sm:$0xff]  ;;  %v100_v24 = vld [vmem:[%s5126_s0 + $0x210] sm:$0xff]  ;;  %v3409_v35 = vld [vmem:[%s5127_s1 + $0x160] sm:$0xff]  }
  0x1a   :  { %2887 = vmatprep.subr.bf16.mxu1 %v3395_v26  ;;  %v287_v26 = vpack.c.bf16 %v98_v20, %v91_v19  ;;  %v97_v31 = vld [vmem:[%s5126_s0 + $0x1f8] sm:$0xff]  ;;  %v112_v33 = vld [vmem:[%s5126_s0 + $0x270] sm:$0xff]  ;;  %v107_v39 = vld [vmem:[%s5126_s0 + $0x248] sm:$0xff] }
  0x1b   :  { %2776 = vmatpush3.bf16.msra.mxu0 %v3394_v25  ;;  %v3407_v25 = vld [vmem:[%s5127_s1 + $0x158] sm:$0xff]   ;;  %v114_v40 = vld [vmem:[%s5126_s0 + $0x280] sm:$0xff]  ;;  %v104_v45 = vld [vmem:[%s5126_s0 + $0x230] sm:$0xff] }
  0x1c   :  { %2777 = vmatprep.subr.bf16.mxu0 %v3397_v28  ;;  %v281_v28 = vpack.c.bf16 %v85_v21, %v78_v18  ;;  %v105_v32 = vld [vmem:[%s5126_s0 + $0x238] sm:$0xff]  ;;  %v3410_v41 = vld [vmem:[%s5127_s1 + $0x120] sm:$0xff]   ;;  %v296_v44 = vpack.c.bf16 %v114_v40, %v107_v39  ;;  %v119_v48 = vld [vmem:[%s5126_s0 + $0x2a8] sm:$0xff] }
  0x1d   :  { %2888 = vmatpush3.bf16.msra.mxu1 %v3396_v27  ;;  %v3408_v27 = vld [vmem:[%s5127_s1 + $0x118] sm:$0xff]   ;;  %v106_v47 = vld [vmem:[%s5126_s0 + $0x240] sm:$0xff]  ;;  %v128_v55 = vld [vmem:[%s5126_s0 + $0x2f0] sm:$0xff] }
  0x1e   :  { %2889 = vmatprep.subr.bf16.mxu1 %v3399_v30  ;;  %v90_v30 = vld [vmem:[%s5126_s0 + $0x1c0] sm:$0xff]  ;;  %v113_v52 = vld [vmem:[%s5126_s0 + $0x278] sm:$0xff]  ;;  %v140_v62 = vld [vmem:[%s5126_s0 + $0x350] sm:$0xff] }
  0x1f   :  { %2778 = vmatpush3.bf16.msra.mxu0 %v3398_v29  ;;  %v289_v29 = vpack.c.bf16 %v100_v24, %v93_v23  ;;  %v286_v36 = vpack.c.bf16 %v97_v31, %v90_v30  ;;  %v126_v49 = vld [vmem:[%s5126_s0 + $0x2e0] sm:$0xff]  ;;  %v295_v57 = vpack.c.bf16 %v113_v52, %v106_v47  ;;  %v133_v61 = vld [vmem:[%s5126_s0 + $0x318] sm:$0xff]  ;;  %v3415_v3 = vld [vmem:[%s5127_s1 + $0x130] sm:$0xff]  }
  0x20   :  { %2987 = vmatprep.subr.bf16.mxu0 %v3401_v38  ;;  %v294_v38 = vpack.c.bf16 %v112_v33, %v105_v32  ;;  %v301_v54 = vpack.c.bf16 %v126_v49, %v119_v48  ;;  %v308_v4 = vpack.c.bf16 %v140_v62, %v133_v61  ;;  %v135_v5 = vld [vmem:[%s5126_s0 + $0x328] sm:$0xff]  ;;  %v142_v6 = vld [vmem:[%s5126_s0 + $0x360] sm:$0xff]  ;;  %v141_v16 = vld [vmem:[%s5126_s0 + $0x358] sm:$0xff] }
  0x21   :  { %2890 = vmatpush3.bf16.msra.mxu1 %v3400_v34  ;;  %v92_v34 = vld [vmem:[%s5126_s0 + $0x1d0] sm:$0xff]  ;;  %v147_v11 = vld [vmem:[%s5126_s0 + $0x388] sm:$0xff]  ;;  %v154_v12 = vld [vmem:[%s5126_s0 + $0x3c0] sm:$0xff] }
  0x22   :  { %851 = vmatmul.mubr.bf16.vlgmr.msra.gmra.mrb[0].mxu0 %v258_v37  ;;  %v99_v37 = vld [vmem:[%s5126_s0 + $0x208] sm:$0xff]  ;;  %v3417_v17 = vld [vmem:[%s5127_s1 + $0x138] sm:$0xff]   ;;  %v315_v18 = vpack.c.bf16 %v154_v12, %v147_v11  ;;  %v156_v20 = vld [vmem:[%s5126_s0 + $0x3d0] sm:$0xff] }
  0x23   :  { %2988 = vmatpush3.bf16.msra.mxu0 %v3402_v42  ;;  %858 = vmatprep.mubr.bf16.mxu0 %v266_v50  ;;  %v3411_v42 = vld [vmem:[%s5127_s1 + $0x180] sm:$0xff]   ;;  %v288_v43 = vpack.c.bf16 %v99_v37, %v92_v34  ;;  %v3412_v50 = vld [vmem:[%s5127_s1 + $0x168] sm:$0xff]   ;;  %v149_v19 = vld [vmem:[%s5126_s0 + $0x398] sm:$0xff] }
  0x24   :  { %1012 = vmatmul.mubr.bf16.vlgmr.msra.gmra.mrb[0].mxu1 %v260_v46  ;;  %2989 = vmatprep.subr.bf16.mxu0 %v3403_v60  ;;  %v111_v46 = vld [vmem:[%s5126_s0 + $0x268] sm:$0xff]  ;;  %v125_v60 = vld [vmem:[%s5126_s0 + $0x2d8] sm:$0xff]  ;;  %v146_v23 = vld [vmem:[%s5126_s0 + $0x380] sm:$0xff] }
  0x25   :  { %1019 = vmatprep.mubr.bf16.mxu1 %v268_v53  ;;  %3188 = vmatprep.subr.bf16.mxu1 %v3411_v42  ;;  %v293_v51 = vpack.c.bf16 %v111_v46, %v104_v45  ;;  %v121_v53 = vld [vmem:[%s5126_s0 + $0x2b8] sm:$0xff]  ;;  %v163_v31 = vld [vmem:[%s5126_s0 + $0x408] sm:$0xff]  ;;  %v170_v32 = vld [vmem:[%s5126_s0 + $0x440] sm:$0xff] }
  0x26   :  { %3189 = vmatpush3.bf16.msra.mxu1 %v3411_v42  ;;  %v303_v58 = vpack.c.bf16 %v128_v55, %v121_v53  ;;  %v153_v24 = vld [vmem:[%s5126_s0 + $0x3b8] sm:$0xff]  ;;  %v324_v34 = vpack.c.bf16 %v170_v32, %v163_v31  ;;  %v175_v37 = vld [vmem:[%s5126_s0 + $0x468] sm:$0xff]  ;;  %v162_v40 = vld [vmem:[%s5126_s0 + $0x400] sm:$0xff] }
  0x27   :  { %2990 = vmatpush3.bf16.msra.mxu0 %v3404_v0  ;;  %v127_v0 = vld [vmem:[%s5126_s0 + $0x2e8] sm:$0xff]  ;;  %v174_v47 = vld [vmem:[%s5126_s0 + $0x460] sm:$0xff]  ;;  %v181_v48 = vld [vmem:[%s5126_s0 + $0x498] sm:$0xff] }
  0x28   :  { %2991 = vmatprep.subr.bf16.mxu0 %v3405_v9  ;;  %v310_v9 = vpack.c.bf16 %v142_v6, %v135_v5  ;;  %v189_v49 = vld [vmem:[%s5126_s0 + $0x4d8] sm:$0xff]  ;;  %v328_v52 = vpack.c.bf16 %v181_v48, %v174_v47  ;;  %v183_v53 = vld [vmem:[%s5126_s0 + $0x4a8] sm:$0xff]  ;;  %v198_v55 = vld [vmem:[%s5126_s0 + $0x520] sm:$0xff] }
  0x29   :  { %v190_v61 = vld [vmem:[%s5126_s0 + $0x4e0] sm:$0xff]  ;;  %v203_v62 = vld [vmem:[%s5126_s0 + $0x548] sm:$0xff]  ;;  %v204_v11 = vld [vmem:[%s5126_s0 + $0x550] sm:$0xff] }
  0x2a   :  { %859 = vmatmul.mubr.bf16.gmra.mrb[4].mxu0 %v265_v56  ;;  %v3413_v56 = vld [vmem:[%s5127_s1 + $0x128] sm:$0xff]   ;;  %v202_v6 = vld [vmem:[%s5126_s0 + $0x540] sm:$0xff] }
  0x2b   :  { %866 = vmatprep.mubr.bf16.mxu0 %v273_v59  ;;  %2992 = vmatpush3.bf16.msra.mxu0 %v3406_v13  ;;  %v118_v59 = vld [vmem:[%s5126_s0 + $0x2a0] sm:$0xff]  ;;  %v3416_v13 = vld [vmem:[%s5127_s1 + $0x178] sm:$0xff]   ;;  %v211_v12 = vld [vmem:[%s5126_s0 + $0x588] sm:$0xff] }
  0x2c   :  { %1020 = vmatmul.mubr.bf16.gmra.mrb[4].mxu1 %v267_v63  ;;  %2993 = vmatprep.subr.bf16.mxu0 %v3407_v25  ;;  %v120_v63 = vld [vmem:[%s5126_s0 + $0x2b0] sm:$0xff]  ;;  %v300_v2 = vpack.c.bf16 %v125_v60, %v118_v59  ;;  %v161_v25 = vld [vmem:[%s5126_s0 + $0x3f8] sm:$0xff]  ;;  %v195_v60 = vld [vmem:[%s5126_s0 + $0x508] sm:$0xff] }
  0x2d   :  { %1027 = vmatprep.mubr.bf16.mxu1 %v275_v1  ;;  %v3414_v1 = vld [vmem:[%s5127_s1 + $0x170] sm:$0xff]   ;;  %v302_v7 = vpack.c.bf16 %v127_v0, %v120_v63  ;;  %v210_v63 = vld [vmem:[%s5126_s0 + $0x580] sm:$0xff]  ;;  %v197_v0 = vld [vmem:[%s5126_s0 + $0x518] sm:$0xff] }
  0x2e   :  { %v188_v59 = vld [vmem:[%s5126_s0 + $0x4d0] sm:$0xff]  ;;  %v337_v5 = vpack.c.bf16 %v197_v0, %v190_v61 }
  0x2f   :  { %2994 = vmatpush3.bf16.msra.mxu0 %v3408_v27  ;;  %v314_v27 = vpack.c.bf16 %v153_v24, %v146_v23 }
  0x30   :  { %2995 = vmatprep.subr.bf16.mxu0 %v3409_v35  ;;  %v160_v35 = vld [vmem:[%s5126_s0 + $0x3f0] sm:$0xff] }
  0x32   :  { %867 = vmatmul.mubr.bf16.gmra.mrb[8].mxu0 %v272_v8  ;;  %v132_v8 = vld [vmem:[%s5126_s0 + $0x310] sm:$0xff] }
  0x33   :  { %874 = vmatprep.mubr.bf16.mxu0 %v280_v10  ;;  %2996 = vmatpush3.bf16.msra.mxu0 %v3410_v41  ;;  %v139_v10 = vld [vmem:[%s5126_s0 + $0x348] sm:$0xff]  ;;  %v169_v41 = vld [vmem:[%s5126_s0 + $0x438] sm:$0xff] }
  0x34   :  { %1028 = vmatmul.mubr.bf16.gmra.mrb[8].mxu1 %v274_v14  ;;  %2997 = vmatprep.subr.bf16.mxu0 %v3412_v50  ;;  %v307_v14 = vpack.c.bf16 %v139_v10, %v132_v8  ;;  %v323_v45 = vpack.c.bf16 %v169_v41, %v162_v40  ;;  %v196_v50 = vld [vmem:[%s5126_s0 + $0x510] sm:$0xff] }
  0x35   :  { %1035 = vmatprep.mubr.bf16.mxu1 %v282_v15  ;;  %v134_v15 = vld [vmem:[%s5126_s0 + $0x320] sm:$0xff]  ;;  %v224_v10 = vld [vmem:[%s5126_s0 + $0x5f0] sm:$0xff] }
  0x36   :  { %v309_v21 = vpack.c.bf16 %v141_v16, %v134_v15  ;;  %v219_v15 = vld [vmem:[%s5126_s0 + $0x5c8] sm:$0xff]  ;;  %v226_v16 = vld [vmem:[%s5126_s0 + $0x600] sm:$0xff] }
  0x37   :  { %2998 = vmatpush3.bf16.msra.mxu0 %v3413_v56  ;;  %v336_v56 = vpack.c.bf16 %v196_v50, %v189_v49 }
  0x38   :  { %2999 = vmatprep.subr.bf16.mxu0 %v3414_v1  ;;  %v335_v1 = vpack.c.bf16 %v195_v60, %v188_v59 }
  0x3a   :  { %875 = vmatmul.mubr.bf16.gmra.mrb[12].mxu0 %v279_v22  ;;  %v317_v22 = vpack.c.bf16 %v156_v20, %v149_v19  ;;  %v216_v19 = vld [vmem:[%s5126_s0 + $0x5b0] sm:$0xff]  ;;  %v223_v20 = vld [vmem:[%s5126_s0 + $0x5e8] sm:$0xff] }
  0x3b   :  { %882 = vmatprep.mubr.bf16.mxu0 %v287_v26  ;;  %3000 = vmatpush3.bf16.msra.mxu0 %v3415_v3  ;;  %v168_v26 = vld [vmem:[%s5126_s0 + $0x430] sm:$0xff]  ;;  %v205_v3 = vld [vmem:[%s5126_s0 + $0x558] sm:$0xff] }
  0x3c   :  { %1036 = vmatmul.mubr.bf16.gmra.mrb[12].mxu1 %v281_v28  ;;  %3001 = vmatprep.subr.bf16.mxu0 %v3416_v13  ;;  %v148_v28 = vld [vmem:[%s5126_s0 + $0x390] sm:$0xff]  ;;  %v322_v30 = vpack.c.bf16 %v168_v26, %v161_v25 }
  0x3d   :  { %1043 = vmatprep.mubr.bf16.mxu1 %v289_v29  ;;  %v155_v29 = vld [vmem:[%s5126_s0 + $0x3c8] sm:$0xff] }
  0x3e   :  { %v316_v33 = vpack.c.bf16 %v155_v29, %v148_v28 }
  0x3f   :  { %3002 = vmatpush3.bf16.msra.mxu0 %v3417_v17  ;;  %v344_v17 = vpack.c.bf16 %v211_v12, %v204_v11 }
  0x42   :  { %883 = vmatmul.mubr.bf16.gmra.mrb[16].mxu0 %v286_v36  ;;  %v167_v36 = vld [vmem:[%s5126_s0 + $0x428] sm:$0xff] }
  0x43   :  { %890 = vmatprep.mubr.bf16.mxu0 %v294_v38  ;;  %v182_v38 = vld [vmem:[%s5126_s0 + $0x4a0] sm:$0xff]  ;;  %v321_v39 = vpack.c.bf16 %v167_v36, %v160_v35 }
  0x44   :  { %1044 = vmatmul.mubr.bf16.gmra.mrb[16].mxu1 %v288_v43  ;;  %v329_v42 = vpack.c.bf16 %v182_v38, %v175_v37  ;;  %v177_v43 = vld [vmem:[%s5126_s0 + $0x478] sm:$0xff] }
  0x45   :  { %1051 = vmatprep.mubr.bf16.mxu1 %v296_v44  ;;  %v184_v44 = vld [vmem:[%s5126_s0 + $0x4b0] sm:$0xff] }
  0x46   :  { %v331_v46 = vpack.c.bf16 %v184_v44, %v177_v43 }
  0x4a   :  { %891 = vmatmul.mubr.bf16.gmra.mrb[20].mxu0 %v293_v51  ;;  %v176_v51 = vld [vmem:[%s5126_s0 + $0x470] sm:$0xff] }
  0x4b   :  { %898 = vmatprep.mubr.bf16.mxu0 %v301_v54  ;;  %v191_v54 = vld [vmem:[%s5126_s0 + $0x4e8] sm:$0xff] }
  0x4c   :  { %1052 = vmatmul.mubr.bf16.gmra.mrb[20].mxu1 %v295_v57  ;;  %v330_v57 = vpack.c.bf16 %v183_v53, %v176_v51 }
  0x4d   :  { %1059 = vmatprep.mubr.bf16.mxu1 %v303_v58  ;;  %v338_v58 = vpack.c.bf16 %v198_v55, %v191_v54 }
  0x52   :  { %899 = vmatmul.mubr.bf16.gmra.mrb[24].mxu0 %v300_v2  ;;  %v343_v2 = vpack.c.bf16 %v210_v63, %v203_v62 }
  0x53   :  { %906 = vmatprep.mubr.bf16.mxu0 %v308_v4  ;;  %v212_v4 = vld [vmem:[%s5126_s0 + $0x590] sm:$0xff] }
  0x54   :  { %1060 = vmatmul.mubr.bf16.gmra.mrb[24].mxu1 %v302_v7  ;;  %v209_v7 = vld [vmem:[%s5126_s0 + $0x578] sm:$0xff]  ;;  %v345_v8 = vpack.c.bf16 %v212_v4, %v205_v3 }
  0x55   :  { %1067 = vmatprep.mubr.bf16.mxu1 %v310_v9  ;;  %v217_v9 = vld [vmem:[%s5126_s0 + $0x5b8] sm:$0xff]  ;;  %v342_v13 = vpack.c.bf16 %v209_v7, %v202_v6 }
  0x5a   :  { %907 = vmatmul.mubr.bf16.gmra.mrb[28].mxu0 %v307_v14  ;;  %v350_v14 = vpack.c.bf16 %v224_v10, %v217_v9 }
  0x5b   :  { %914 = vmatprep.mubr.bf16.mxu0 %v315_v18  ;;  %v352_v18 = vpack.c.bf16 %v226_v16, %v219_v15 }
  0x5c   :  { %1068 = vmatmul.mubr.bf16.gmra.mrb[28].mxu1 %v309_v21  ;;  %v231_v21 = vld [vmem:[%s5126_s0 + $0x628] sm:$0xff] }
  0x5d   :  { %1075 = vmatprep.mubr.bf16.mxu1 %v317_v22  ;;  %v238_v22 = vld [vmem:[%s5126_s0 + $0x660] sm:$0xff] }
  0x62   :  { %915 = vmatmul.mubr.bf16.gmra.mrb[32].mxu0 %v314_v27 }
  0x63   :  { %922 = vmatprep.mubr.bf16.mxu0 %v322_v30 }
  0x64   :  { %1076 = vmatmul.mubr.bf16.gmra.mrb[32].mxu1 %v316_v33 }
  0x65   :  { %1083 = vmatprep.mubr.bf16.mxu1 %v324_v34 }
  0x6a   :  { %923 = vmatmul.mubr.bf16.gmra.mrb[36].mxu0 %v321_v39 }
  0x6b   :  { %930 = vmatprep.mubr.bf16.mxu0 %v329_v42 }
  0x6c   :  { %1084 = vmatmul.mubr.bf16.gmra.mrb[36].mxu1 %v323_v45 }
  0x6d   :  { %1091 = vmatprep.mubr.bf16.mxu1 %v331_v46 }
  0x72   :  { %931 = vmatmul.mubr.bf16.gmra.mrb[40].mxu0 %v328_v52 }
  0x73   :  { %938 = vmatprep.mubr.bf16.mxu0 %v336_v56 }
  0x74   :  { %1092 = vmatmul.mubr.bf16.gmra.mrb[40].mxu1 %v330_v57 }
  0x75   :  { %1099 = vmatprep.mubr.bf16.mxu1 %v338_v58 }
  0x7a   :  { %939 = vmatmul.mubr.bf16.gmra.mrb[44].mxu0 %v335_v1 }
  0x7b   :  { %946 = vmatprep.mubr.bf16.mxu0 %v343_v2 }
  0x7c   :  { %1100 = vmatmul.mubr.bf16.gmra.mrb[44].mxu1 %v337_v5 }
  0x7d   :  { %1107 = vmatprep.mubr.bf16.mxu1 %v345_v8 }
  0x82   :  { %947 = vmatmul.mubr.bf16.gmra.mrb[48].mxu0 %v342_v13 }
  0x83   :  { %954 = vmatprep.mubr.bf16.mxu0 %v350_v14 }
  0x84   :  { %14 = vsyncpa [#allocation3], 0  ;;  %1108 = vmatmul.mubr.bf16.gmra.mrb[48].mxu1 %v344_v17  ;;  %v349_v23 = vpack.c.bf16 %v223_v20, %v216_v19  ;;  %v218_v24 = vld [vmem:[%s5126_s0 + $0x5c0] sm:$0xff]  ;;  %v225_v25 = vld [vmem:[%s5126_s0 + $0x5f8] sm:$0xff]  ;;  %v357_v26 = vpack.c.bf16 %v238_v22, %v231_v21  ;;  %vm769_vm0 = vcmask 130048  }
  0x85   :  { %1115 = vmatprep.mubr.bf16.mxu1 %v352_v18  ;;  %v233_v27 = vld [vmem:[%s5126_s0 + $0x638] sm:$0xff]  ;;  %v240_v28 = vld [vmem:[%s5126_s0 + $0x670] sm:$0xff]  ;;  %v351_v29 = vpack.c.bf16 %v225_v25, %v218_v24  ;;  %v230_v31 = vld [vmem:[%s5126_s0 + $0x620] sm:$0xff] }
  0x86   :  { %v359_v30 = vpack.c.bf16 %v240_v28, %v233_v27  ;;  %v237_v32 = vld [vmem:[%s5126_s0 + $0x658] sm:$0xff]  ;;  %v252_v34 = vld [vmem:[%s5126_s0 + $0x6d0] sm:$0xff]  ;;  %v239_v37 = vld [vmem:[%s5126_s0 + $0x668] sm:$0xff] }
  0x87   :  { %v245_v33 = vld [vmem:[%s5126_s0 + $0x698] sm:$0xff]  ;;  %v356_v35 = vpack.c.bf16 %v237_v32, %v230_v31  ;;  %v232_v36 = vld [vmem:[%s5126_s0 + $0x630] sm:$0xff]  ;;  %v247_v39 = vld [vmem:[%s5126_s0 + $0x6a8] sm:$0xff] }
  0x88   :  { %v364_v38 = vpack.c.bf16 %v252_v34, %v245_v33  ;;  %v254_v40 = vld [vmem:[%s5126_s0 + $0x6e0] sm:$0xff]  ;;  %v358_v41 = vpack.c.bf16 %v239_v37, %v232_v36  ;;  %v244_v43 = vld [vmem:[%s5126_s0 + $0x690] sm:$0xff]  ;;  %v251_v44 = vld [vmem:[%s5126_s0 + $0x6c8] sm:$0xff] }
  0x89   :  { %v366_v42 = vpack.c.bf16 %v254_v40, %v247_v39  ;;  %v39_v45 = vld [vmem:[%s5126_s0 + $0x28] sm:$0xff]  ;;  %v46_v46 = vld [vmem:[%s5126_s0 + $0x60] sm:$0xff]  ;;  %v363_v47 = vpack.c.bf16 %v251_v44, %v244_v43  ;;  %v253_v49 = vld [vmem:[%s5126_s0 + $0x6d8] sm:$0xff] }
  0x8a   :  { %955 = vmatmul.mubr.bf16.gmra.mrb[52].mxu0 %v349_v23  ;;  %v246_v48 = vld [vmem:[%s5126_s0 + $0x6a0] sm:$0xff]  ;;  %v263_v50 = vpack.c.bf16 %v46_v46, %v39_v45  ;;  %v40_v51 = vld [vmem:[%s5126_s0 + $0x30] sm:$0xff]  ;;  %v47_v52 = vld [vmem:[%s5126_s0 + $0x68] sm:$0xff] }
  0x8b   :  { %962 = vmatprep.mubr.bf16.mxu0 %v357_v26  ;;  %v365_v53 = vpack.c.bf16 %v253_v49, %v246_v48  ;;  %v264_v54 = vpack.c.bf16 %v47_v52, %v40_v51  ;;  %v38_v55 = vld [vmem:[%s5126_s0 + $0x20] sm:$0xff]  ;;  %v45_v56 = vld [vmem:[%s5126_s0 + $0x58] sm:$0xff]  ;;  %v60_v58 = vld [vmem:[%s5126_s0 + $0xd0] sm:$0xff] }
  0x8c   :  { %1116 = vmatmul.mubr.bf16.gmra.mrb[52].mxu1 %v351_v29  ;;  %v53_v57 = vld [vmem:[%s5126_s0 + $0x98] sm:$0xff]  ;;  %v262_v59 = vpack.c.bf16 %v45_v56, %v38_v55  ;;  %v54_v60 = vld [vmem:[%s5126_s0 + $0xa0] sm:$0xff]  ;;  %v68_v63 = vld [vmem:[%s5126_s0 + $0x110] sm:$0xff] }
  0x8d   :  { %1123 = vmatprep.mubr.bf16.mxu1 %v359_v30  ;;  %v61_v61 = vld [vmem:[%s5126_s0 + $0xd8] sm:$0xff]  ;;  %v270_v62 = vpack.c.bf16 %v60_v58, %v53_v57  ;;  %v75_v0 = vld [vmem:[%s5126_s0 + $0x148] sm:$0xff]  ;;  %v52_v3 = vld [vmem:[%s5126_s0 + $0x90] sm:$0xff] }
  0x8e   :  { %v271_v1 = vpack.c.bf16 %v61_v61, %v54_v60  ;;  %v278_v2 = vpack.c.bf16 %v75_v0, %v68_v63  ;;  %v59_v4 = vld [vmem:[%s5126_s0 + $0xc8] sm:$0xff]  ;;  %v74_v6 = vld [vmem:[%s5126_s0 + $0x140] sm:$0xff]  ;;  %v89_v9 = vld [vmem:[%s5126_s0 + $0x1b8] sm:$0xff] }
  0x8f   :  { %v67_v5 = vld [vmem:[%s5126_s0 + $0x108] sm:$0xff]  ;;  %v269_v7 = vpack.c.bf16 %v59_v4, %v52_v3  ;;  %v82_v8 = vld [vmem:[%s5126_s0 + $0x180] sm:$0xff]  ;;  %v96_v11 = vld [vmem:[%s5126_s0 + $0x1f0] sm:$0xff] }
  0x90   :  { %v277_v10 = vpack.c.bf16 %v74_v6, %v67_v5  ;;  %v103_v12 = vld [vmem:[%s5126_s0 + $0x228] sm:$0xff]  ;;  %v285_v13 = vpack.c.bf16 %v89_v9, %v82_v8  ;;  %v66_v15 = vld [vmem:[%s5126_s0 + $0x100] sm:$0xff]  ;;  %v73_v16 = vld [vmem:[%s5126_s0 + $0x138] sm:$0xff] }
  0x91   :  { %v292_v14 = vpack.c.bf16 %v103_v12, %v96_v11  ;;  %v81_v17 = vld [vmem:[%s5126_s0 + $0x178] sm:$0xff]  ;;  %v88_v18 = vld [vmem:[%s5126_s0 + $0x1b0] sm:$0xff]  ;;  %v276_v19 = vpack.c.bf16 %v73_v16, %v66_v15  ;;  %v110_v20 = vld [vmem:[%s5126_s0 + $0x260] sm:$0xff] }
  0x92   :  { %963 = vmatmul.mubr.bf16.gmra.mrb[56].mxu0 %v356_v35  ;;  %v117_v21 = vld [vmem:[%s5126_s0 + $0x298] sm:$0xff]  ;;  %v284_v22 = vpack.c.bf16 %v88_v18, %v81_v17  ;;  %v124_v23 = vld [vmem:[%s5126_s0 + $0x2d0] sm:$0xff]  ;;  %v131_v24 = vld [vmem:[%s5126_s0 + $0x308] sm:$0xff] }
  0x93   :  { %970 = vmatprep.mubr.bf16.mxu0 %v364_v38  ;;  %v299_v25 = vpack.c.bf16 %v117_v21, %v110_v20  ;;  %v306_v26 = vpack.c.bf16 %v131_v24, %v124_v23  ;;  %v80_v27 = vld [vmem:[%s5126_s0 + $0x170] sm:$0xff]  ;;  %v87_v28 = vld [vmem:[%s5126_s0 + $0x1a8] sm:$0xff]  ;;  %v102_v30 = vld [vmem:[%s5126_s0 + $0x220] sm:$0xff] }
  0x94   :  { %1124 = vmatmul.mubr.bf16.gmra.mrb[56].mxu1 %v358_v41  ;;  %v95_v29 = vld [vmem:[%s5126_s0 + $0x1e8] sm:$0xff]  ;;  %v283_v31 = vpack.c.bf16 %v87_v28, %v80_v27  ;;  %v138_v32 = vld [vmem:[%s5126_s0 + $0x340] sm:$0xff]  ;;  %v145_v33 = vld [vmem:[%s5126_s0 + $0x378] sm:$0xff] }
  0x95   :  { %1131 = vmatprep.mubr.bf16.mxu1 %v366_v42  ;;  %v291_v34 = vpack.c.bf16 %v102_v30, %v95_v29  ;;  %v152_v35 = vld [vmem:[%s5126_s0 + $0x3b0] sm:$0xff]  ;;  %v159_v36 = vld [vmem:[%s5126_s0 + $0x3e8] sm:$0xff]  ;;  %v313_v37 = vpack.c.bf16 %v145_v33, %v138_v32  ;;  %v94_v39 = vld [vmem:[%s5126_s0 + $0x1e0] sm:$0xff] }
  0x96   :  { %v320_v38 = vpack.c.bf16 %v159_v36, %v152_v35  ;;  %v101_v40 = vld [vmem:[%s5126_s0 + $0x218] sm:$0xff]  ;;  %v116_v42 = vld [vmem:[%s5126_s0 + $0x290] sm:$0xff]  ;;  %v166_v44 = vld [vmem:[%s5126_s0 + $0x420] sm:$0xff] }
  0x97   :  { %v109_v41 = vld [vmem:[%s5126_s0 + $0x258] sm:$0xff]  ;;  %v290_v43 = vpack.c.bf16 %v101_v40, %v94_v39  ;;  %v187_v48 = vld [vmem:[%s5126_s0 + $0x4c8] sm:$0xff]  ;;  %v108_v51 = vld [vmem:[%s5126_s0 + $0x250] sm:$0xff] }
  0x98   :  { %v173_v45 = vld [vmem:[%s5126_s0 + $0x458] sm:$0xff]  ;;  %v298_v46 = vpack.c.bf16 %v116_v42, %v109_v41  ;;  %v115_v52 = vld [vmem:[%s5126_s0 + $0x288] sm:$0xff]  ;;  %v194_v56 = vld [vmem:[%s5126_s0 + $0x500] sm:$0xff] }
  0x99   :  { %v327_v49 = vpack.c.bf16 %v173_v45, %v166_v44  ;;  %v297_v55 = vpack.c.bf16 %v115_v52, %v108_v51  ;;  %v201_v57 = vld [vmem:[%s5126_s0 + $0x538] sm:$0xff]  ;;  %v215_v60 = vld [vmem:[%s5126_s0 + $0x5a8] sm:$0xff]  ;;  %v122_v63 = vld [vmem:[%s5126_s0 + $0x2c0] sm:$0xff] }
  0x9a   :  { %971 = vmatmul.mubr.bf16.gmra.mrb[60].mxu0 %v363_v47  ;;  %v180_v47 = vld [vmem:[%s5126_s0 + $0x490] sm:$0xff]  ;;  %v341_v61 = vpack.c.bf16 %v201_v57, %v194_v56  ;;  %v129_v0 = vld [vmem:[%s5126_s0 + $0x2f8] sm:$0xff]  ;;  %v222_v4 = vld [vmem:[%s5126_s0 + $0x5e0] sm:$0xff] }
  0x9b   :  { %1172 = vmatprep.mubr.bf16.mxu0 %v263_v50  ;;  %v334_v50 = vpack.c.bf16 %v187_v48, %v180_v47  ;;  %v304_v3 = vpack.c.bf16 %v129_v0, %v122_v63  ;;  %v229_v5 = vld [vmem:[%s5126_s0 + $0x618] sm:$0xff]  ;;  %v243_v8 = vld [vmem:[%s5126_s0 + $0x688] sm:$0xff]  ;;  %v136_v11 = vld [vmem:[%s5126_s0 + $0x330] sm:$0xff] }
  0x9c   :  { %1132 = vmatmul.mubr.bf16.gmra.mrb[60].mxu1 %v365_v53  ;;  %v123_v53 = vld [vmem:[%s5126_s0 + $0x2c8] sm:$0xff]  ;;  %v355_v9 = vpack.c.bf16 %v229_v5, %v222_v4  ;;  %v250_v16 = vld [vmem:[%s5126_s0 + $0x6c0] sm:$0xff]  ;;  %v257_v17 = vld [vmem:[%s5126_s0 + $0x6f8] sm:$0xff] }
  0x9d   :  { %3190 = vmatprep.mubr.msk.bf16.mxu1 %vm769_vm0, %v264_v54  ;;  %v130_v54 = vld [vmem:[%s5126_s0 + $0x300] sm:$0xff]  ;;  %v143_v12 = vld [vmem:[%s5126_s0 + $0x368] sm:$0xff]  ;;  %v157_v21 = vld [vmem:[%s5126_s0 + $0x3d8] sm:$0xff] }
  0x9e   :  { %v305_v58 = vpack.c.bf16 %v130_v54, %v123_v53  ;;  %v311_v15 = vpack.c.bf16 %v143_v12, %v136_v11  ;;  %v150_v20 = vld [vmem:[%s5126_s0 + $0x3a0] sm:$0xff]  ;;  %v172_v23 = vld [vmem:[%s5126_s0 + $0x450] sm:$0xff]  ;;  %v171_v27 = vld [vmem:[%s5126_s0 + $0x448] sm:$0xff] }
  0x9f   :  { %v318_v24 = vpack.c.bf16 %v157_v21, %v150_v20  ;;  %v179_v28 = vld [vmem:[%s5126_s0 + $0x488] sm:$0xff]  ;;  %v186_v29 = vld [vmem:[%s5126_s0 + $0x4c0] sm:$0xff]  ;;  %v193_v35 = vld [vmem:[%s5126_s0 + $0x4f8] sm:$0xff] }
  0xa0   :  { %v3418_v32 = vld [vmem:[%s5129_s3] sm:$0xff]   ;;  %v200_v36 = vld [vmem:[%s5126_s0 + $0x530] sm:$0xff]  ;;  %v199_v42 = vld [vmem:[%s5126_s0 + $0x528] sm:$0xff] }
  0xa1   :  { %v178_v33 = vld [vmem:[%s5126_s0 + $0x480] sm:$0xff]  ;;  %3222 = vmatprep.subr.bf16.mxu1 %v3418_v32  ;;  %v340_v39 = vpack.c.bf16 %v200_v36, %v193_v35  ;;  %v3420_v40 = vld [vmem:[%s5129_s3 + $0x10] sm:$0xff]   ;;  %v213_v0 = vld [vmem:[%s5126_s0 + $0x598] sm:$0xff] }
  0xa2   :  { %1173 = vmatmul.mubr.bf16.vlgmr.msra.gmra.mrb[64].mxu0 %v262_v59  ;;  %v208_v59 = vld [vmem:[%s5126_s0 + $0x570] sm:$0xff]  ;;  %v214_v44 = vld [vmem:[%s5126_s0 + $0x5a0] sm:$0xff] }
  0xa3   :  { %1180 = vmatprep.mubr.bf16.mxu0 %v270_v62  ;;  %v348_v62 = vpack.c.bf16 %v215_v60, %v208_v59  ;;  %v192_v41 = vld [vmem:[%s5126_s0 + $0x4f0] sm:$0xff]  ;;  %v3422_v60 = vld [vmem:[%s5129_s3 + $0x20] sm:$0xff]  }
  0xa4   :  { %3191 = vmatmul.mubr.msk.bf16.vlgmr.msra.gmra.mrb[64].mxu1 %vm769_vm0, %v271_v1  ;;  %v137_v1 = vld [vmem:[%s5126_s0 + $0x338] sm:$0xff]  ;;  %v339_v48 = vpack.c.bf16 %v199_v42, %v192_v41  ;;  %v206_v63 = vld [vmem:[%s5126_s0 + $0x560] sm:$0xff]  ;;  %v228_v4 = vld [vmem:[%s5126_s0 + $0x610] sm:$0xff] }
  0xa5   :  { %3194 = vmatprep.mubr.msk.bf16.mxu1 %vm769_vm0, %v278_v2  ;;  %v144_v2 = vld [vmem:[%s5126_s0 + $0x370] sm:$0xff]  ;;  %3223 = vmatpush3.bf16.msra.mxu1 %v3418_v32 }
  0xa6   :  { %v312_v6 = vpack.c.bf16 %v144_v2, %v137_v1  ;;  %v3424_v20 = vld [vmem:[%s5129_s3 + $0x30] sm:$0xff]  }
  0xaa   :  { %1181 = vmatmul.mubr.bf16.gmra.mrb[68].mxu0 %v269_v7  ;;  %v236_v7 = vld [vmem:[%s5126_s0 + $0x650] sm:$0xff] }
  0xab   :  { %1188 = vmatprep.mubr.bf16.mxu0 %v277_v10  ;;  %v362_v10 = vpack.c.bf16 %v243_v8, %v236_v7  ;;  %v346_v8 = vpack.c.bf16 %v213_v0, %v206_v63 }
  0xac   :  { %3195 = vmatmul.mubr.msk.bf16.gmra.mrb[68].mxu1 %vm769_vm0, %v285_v13  ;;  %v151_v13 = vld [vmem:[%s5126_s0 + $0x3a8] sm:$0xff] }
  0xad   :  { %3198 = vmatprep.mubr.msk.bf16.mxu1 %vm769_vm0, %v292_v14  ;;  %v158_v14 = vld [vmem:[%s5126_s0 + $0x3e0] sm:$0xff] }
  0xae   :  { %v319_v18 = vpack.c.bf16 %v158_v14, %v151_v13 }
  0xb2   :  { %1189 = vmatmul.mubr.bf16.gmra.mrb[72].mxu0 %v276_v19  ;;  %v369_v19 = vpack.c.bf16 %v257_v17, %v250_v16 }
  0xb3   :  { %1196 = vmatprep.mubr.bf16.mxu0 %v284_v22  ;;  %v165_v22 = vld [vmem:[%s5126_s0 + $0x418] sm:$0xff] }
  0xb4   :  { %3199 = vmatmul.mubr.msk.bf16.gmra.mrb[72].mxu1 %vm769_vm0, %v299_v25  ;;  %v326_v25 = vpack.c.bf16 %v172_v23, %v165_v22  ;;  %v220_v23 = vld [vmem:[%s5126_s0 + $0x5d0] sm:$0xff] }
  0xb5   :  { %3202 = vmatprep.mubr.msk.bf16.mxu1 %vm769_vm0, %v306_v26  ;;  %v164_v26 = vld [vmem:[%s5126_s0 + $0x410] sm:$0xff] }
  0xb6   :  { %v325_v30 = vpack.c.bf16 %v171_v27, %v164_v26  ;;  %v235_v27 = vld [vmem:[%s5126_s0 + $0x648] sm:$0xff] }
  0xba   :  { %1197 = vmatmul.mubr.bf16.gmra.mrb[76].mxu0 %v283_v31  ;;  %v333_v31 = vpack.c.bf16 %v186_v29, %v179_v28  ;;  %v242_v28 = vld [vmem:[%s5126_s0 + $0x680] sm:$0xff] }
  0xbb   :  { %1204 = vmatprep.mubr.bf16.mxu0 %v291_v34  ;;  %v185_v34 = vld [vmem:[%s5126_s0 + $0x4b8] sm:$0xff]  ;;  %v361_v36 = vpack.c.bf16 %v242_v28, %v235_v27 }
  0xbc   :  { %3203 = vmatmul.mubr.msk.bf16.gmra.mrb[76].mxu1 %vm769_vm0, %v313_v37  ;;  %v332_v37 = vpack.c.bf16 %v185_v34, %v178_v33  ;;  %v3425_v33 = vld [vmem:[%s5129_s3 + $0x38] sm:$0xff]  }
  0xbd   :  { %3206 = vmatprep.mubr.msk.bf16.mxu1 %vm769_vm0, %v320_v38  ;;  %v3419_v38 = vld [vmem:[%s5129_s3 + $0x8] sm:$0xff]  }
  0xbe   :  { %3224 = vmatprep.subr.bf16.mxu1 %v3419_v38 }
  0xbf   :  { %3225 = vmatpush3.bf16.msra.mxu1 %v3419_v38 }
  0xc0   :  { %3226 = vmatprep.subr.bf16.mxu1 %v3420_v40 }
  0xc2   :  { %1205 = vmatmul.mubr.bf16.gmra.mrb[80].mxu0 %v290_v43  ;;  %v207_v43 = vld [vmem:[%s5126_s0 + $0x568] sm:$0xff] }
  0xc3   :  { %1212 = vmatprep.mubr.bf16.mxu0 %v298_v46  ;;  %3227 = vmatpush3.bf16.msra.mxu1 %v3420_v40  ;;  %v4452_v46 = vld [vmem:[%s5128_s2] ss:$0 sm:$0xff]  ;;  %v347_v52 = vpack.c.bf16 %v214_v44, %v207_v43 }
  0xc4   :  { %3207 = vmatmul.mubr.msk.bf16.gmra.mrb[80].mxu1 %vm769_vm0, %v327_v49  ;;  %v3421_v49 = vld [vmem:[%s5129_s3 + $0x18] sm:$0xff]  }
  0xc5   :  { %3210 = vmatprep.mubr.msk.bf16.mxu1 %vm769_vm0, %v334_v50  ;;  %3228 = vmatprep.subr.bf16.mxu1 %v3421_v49 }
  0xc7   :  { %3229 = vmatpush3.bf16.msra.mxu1 %v3421_v49 }
  0xc8   :  { %3230 = vmatprep.subr.bf16.mxu1 %v3422_v60 }
  0xca   :  { %1213 = vmatmul.mubr.bf16.gmra.mrb[84].mxu0 %v297_v55 }
  0xcb   :  { %1220 = vmatprep.mubr.bf16.mxu0 %v305_v58  ;;  %3231 = vmatpush3.bf16.msra.mxu1 %v3422_v60 }
  0xcc   :  { %3211 = vmatmul.mubr.msk.bf16.gmra.mrb[84].mxu1 %vm769_vm0, %v341_v61 }
  0xcd   :  { %3214 = vmatprep.mubr.msk.bf16.mxu1 %vm769_vm0, %v348_v62 }
  0xd2   :  { %1221 = vmatmul.mubr.bf16.gmra.mrb[88].mxu0 %v304_v3  ;;  %v221_v3 = vld [vmem:[%s5126_s0 + $0x5d8] sm:$0xff] }
  0xd3   :  { %1228 = vmatprep.mubr.bf16.mxu0 %v312_v6  ;;  %v354_v12 = vpack.c.bf16 %v228_v4, %v221_v3 }
  0xd4   :  { %3215 = vmatmul.mubr.msk.bf16.gmra.mrb[88].mxu1 %vm769_vm0, %v355_v9  ;;  %v3423_v9 = vld [vmem:[%s5129_s3 + $0x28] sm:$0xff]  }
  0xd5   :  { %3218 = vmatprep.mubr.msk.bf16.mxu1 %vm769_vm0, %v362_v10  ;;  %3232 = vmatprep.subr.bf16.mxu1 %v3423_v9 }
  0xd6   :  { %3233 = vmatpush3.bf16.msra.mxu1 %v3423_v9 }
  0xd7   :  { %3234 = vmatprep.subr.bf16.mxu1 %v3424_v20 }
  0xda   :  { %1229 = vmatmul.mubr.bf16.gmra.mrb[92].mxu0 %v311_v15  ;;  %3235 = vmatpush3.bf16.msra.mxu1 %v3424_v20 }
  0xdb   :  { %1236 = vmatprep.mubr.bf16.mxu0 %v319_v18  ;;  %3236 = vmatprep.subr.bf16.mxu1 %v3425_v33 }
  0xdc   :  { %3219 = vmatmul.mubr.msk.bf16.gmra.mrb[92].mxu1 %vm769_vm0, %v369_v19 }
  0xde   :  { %3237 = vmatpush3.bf16.msra.mxu1 %v3425_v33 }
  0xe2   :  { %1237 = vmatmul.mubr.bf16.gmra.mrb[96].mxu0 %v318_v24  ;;  %v227_v24 = vld [vmem:[%s5126_s0 + $0x608] sm:$0xff] }
  0xe3   :  { %1244 = vmatprep.mubr.bf16.mxu0 %v326_v25  ;;  %v353_v32 = vpack.c.bf16 %v227_v24, %v220_v23 }
  0xea   :  { %1245 = vmatmul.mubr.bf16.gmra.mrb[100].mxu0 %v325_v30 }
  0xeb   :  { %1252 = vmatprep.mubr.bf16.mxu0 %v333_v31 }
  0xf2   :  { %1253 = vmatmul.mubr.bf16.gmra.mrb[104].mxu0 %v332_v37 }
  0xf3   :  { %1260 = vmatprep.mubr.bf16.mxu0 %v340_v39 }
  0xf5   :  { %v2779_v45 = vpop.f32.mrb[0].mxu0 }
  0xf6   :  { %v2780_v47 = vpop.f32.mrb[1].mxu0 }
  0xf7   :  { %v2781_v50 = vadd.f32 %v2780_v47, %v2779_v45  ;;  %v2782_v51 = vpop.f32.mrb[2].mxu0  ;;  %v2891_v53 = vpop.f32.mrb[0].mxu1  ;;  %v234_v47 = vld [vmem:[%s5126_s0 + $0x640] sm:$0xff] }
  0xf8   :  { %v2783_v54 = vpop.f32.mrb[3].mxu0  ;;  %v2892_v57 = vpop.f32.mrb[1].mxu1 }
  0xf9   :  { %v853_v55 = vadd.f32 %v2781_v50, %v4452_v46  ;;  %v2784_v56 = vadd.f32 %v2783_v54, %v2782_v51  ;;  %v2893_v58 = vadd.f32 %v2892_v57, %v2891_v53  ;;  %v2894_v59 = vpop.f32.mrb[2].mxu1  ;;  %v249_v51 = vld [vmem:[%s5126_s0 + $0x6b8] sm:$0xff] }
  0xfa   :  { %1261 = vmatmul.mubr.bf16.gmra.mrb[108].mxu0 %v339_v48  ;;  %v2895_v62 = vpop.f32.mrb[3].mxu1  ;;  %v241_v48 = vld [vmem:[%s5126_s0 + $0x678] sm:$0xff] }
  0xfb   :  { %v856_v61 = vadd.f32 %v2784_v56, %v4452_v46  ;;  %1268 = vmatprep.mubr.bf16.mxu0 %v347_v52  ;;  %v4468_v1 = vadd.f32 %v2893_v58, %v853_v55  ;;  %v2896_v2 = vadd.f32 %v2895_v62, %v2894_v59  ;;  %v256_v52 = vld [vmem:[%s5126_s0 + $0x6f0] sm:$0xff]  ;;  %v360_v56 = vpack.c.bf16 %v241_v48, %v234_v47 }
  0xfc   :  { %v368_v59 = vpack.c.bf16 %v256_v52, %v249_v51 }
  0xfd   :  { %v2785_v5 = vpop.f32.mrb[4].mxu0  ;;  %v4476_v6 = vadd.f32 %v2896_v2, %v856_v61 }
  0xfe   :  { %v2786_v7 = vpop.f32.mrb[5].mxu0 }
  0xff   :  { %v2787_v10 = vadd.f32 %v2786_v7, %v2785_v5  ;;  %v2788_v11 = vpop.f32.mrb[6].mxu0  ;;  %v2897_v13 = vpop.f32.mrb[4].mxu1  ;;  %v248_v7 = vld [vmem:[%s5126_s0 + $0x6b0] sm:$0xff] }
 0x100   :  { %v2789_v14 = vpop.f32.mrb[7].mxu0  ;;  %v2898_v17 = vpop.f32.mrb[5].mxu1 }
 0x101   :  { %v861_v15 = vadd.f32 %v2787_v10, %v4452_v46  ;;  %v2790_v16 = vadd.f32 %v2789_v14, %v2788_v11  ;;  %v2899_v18 = vadd.f32 %v2898_v17, %v2897_v13  ;;  %v2900_v19 = vpop.f32.mrb[6].mxu1 }
 0x102   :  { %1269 = vmatmul.mubr.bf16.gmra.mrb[112].mxu0 %v346_v8  ;;  %v2901_v22 = vpop.f32.mrb[7].mxu1  ;;  %v255_v8 = vld [vmem:[%s5126_s0 + $0x6e8] sm:$0xff] }
 0x103   :  { %v864_v21 = vadd.f32 %v2790_v16, %v4452_v46  ;;  %1276 = vmatprep.mubr.bf16.mxu0 %v354_v12  ;;  %v4492_v25 = vadd.f32 %v2899_v18, %v861_v15  ;;  %v2902_v26 = vadd.f32 %v2901_v22, %v2900_v19  ;;  %v367_v14 = vpack.c.bf16 %v255_v8, %v248_v7 }
 0x105   :  { %v2791_v29 = vpop.f32.mrb[8].mxu0  ;;  %v4500_v30 = vadd.f32 %v2902_v26, %v864_v21 }
 0x106   :  { %v2792_v31 = vpop.f32.mrb[9].mxu0 }
 0x107   :  { %v2793_v34 = vadd.f32 %v2792_v31, %v2791_v29  ;;  %v2794_v35 = vpop.f32.mrb[10].mxu0  ;;  %v2903_v37 = vpop.f32.mrb[8].mxu1 }
 0x108   :  { %v2795_v38 = vpop.f32.mrb[11].mxu0  ;;  %v2904_v41 = vpop.f32.mrb[9].mxu1 }
 0x109   :  { %v869_v39 = vadd.f32 %v2793_v34, %v4452_v46  ;;  %v2796_v40 = vadd.f32 %v2795_v38, %v2794_v35  ;;  %v2905_v42 = vadd.f32 %v2904_v41, %v2903_v37  ;;  %v2906_v43 = vpop.f32.mrb[10].mxu1 }
 0x10a   :  { %1277 = vmatmul.mubr.bf16.gmra.mrb[116].mxu0 %v353_v32  ;;  %v2907_v45 = vpop.f32.mrb[11].mxu1 }
 0x10b   :  { %v872_v44 = vadd.f32 %v2796_v40, %v4452_v46  ;;  %1284 = vmatprep.mubr.bf16.mxu0 %v361_v36  ;;  %v4513_v49 = vadd.f32 %v2905_v42, %v869_v39  ;;  %v2908_v50 = vadd.f32 %v2907_v45, %v2906_v43 }
 0x10d   :  { %v2797_v53 = vpop.f32.mrb[12].mxu0  ;;  %v4521_v54 = vadd.f32 %v2908_v50, %v872_v44 }
 0x10e   :  { %v2798_v55 = vpop.f32.mrb[13].mxu0 }
 0x10f   :  { %v2799_v57 = vadd.f32 %v2798_v55, %v2797_v53  ;;  %v2800_v58 = vpop.f32.mrb[14].mxu0  ;;  %v2909_v60 = vpop.f32.mrb[12].mxu1 }
 0x110   :  { %v2801_v61 = vpop.f32.mrb[15].mxu0  ;;  %v2910_v0 = vpop.f32.mrb[13].mxu1 }
 0x111   :  { %v877_v62 = vadd.f32 %v2799_v57, %v4452_v46  ;;  %v2802_v63 = vadd.f32 %v2801_v61, %v2800_v58  ;;  %v2911_v2 = vadd.f32 %v2910_v0, %v2909_v60  ;;  %v2912_v3 = vpop.f32.mrb[14].mxu1 }
 0x112   :  { %1285 = vmatmul.mubr.bf16.gmra.mrb[120].mxu0 %v360_v56  ;;  %v2913_v5 = vpop.f32.mrb[15].mxu1 }
 0x113   :  { %v880_v4 = vadd.f32 %v2802_v63, %v4452_v46  ;;  %1292 = vmatprep.mubr.bf16.mxu0 %v368_v59  ;;  %v4531_v9 = vadd.f32 %v2911_v2, %v877_v62  ;;  %v2914_v10 = vadd.f32 %v2913_v5, %v2912_v3 }
 0x115   :  { %v2803_v11 = vpop.f32.mrb[16].mxu0  ;;  %v4533_v12 = vadd.f32 %v2914_v10, %v880_v4 }
 0x116   :  { %v2804_v13 = vpop.f32.mrb[17].mxu0 }
 0x117   :  { %v2805_v15 = vadd.f32 %v2804_v13, %v2803_v11  ;;  %v2806_v16 = vpop.f32.mrb[18].mxu0  ;;  %v2915_v17 = vpop.f32.mrb[16].mxu1 }
 0x118   :  { %v2807_v18 = vpop.f32.mrb[19].mxu0  ;;  %v2916_v21 = vpop.f32.mrb[17].mxu1 }
 0x119   :  { %v885_v19 = vadd.f32 %v2805_v15, %v4452_v46  ;;  %v2808_v20 = vadd.f32 %v2807_v18, %v2806_v16  ;;  %v2917_v22 = vadd.f32 %v2916_v21, %v2915_v17  ;;  %v2918_v23 = vpop.f32.mrb[18].mxu1 }
 0x11a   :  { %1293 = vmatmul.mubr.bf16.gmra.mrb[124].mxu0 %v367_v14  ;;  %v2919_v26 = vpop.f32.mrb[19].mxu1 }
 0x11b   :  { %v888_v24 = vadd.f32 %v2808_v20, %v4452_v46  ;;  %v4537_v27 = vadd.f32 %v2917_v22, %v885_v19  ;;  %v2920_v28 = vadd.f32 %v2919_v26, %v2918_v23 }
 0x11d   :  { %v2809_v29 = vpop.f32.mrb[20].mxu0  ;;  %v4539_v31 = vadd.f32 %v2920_v28, %v888_v24 }
 0x11e   :  { %v2810_v32 = vpop.f32.mrb[21].mxu0 }
 0x11f   :  { %v2811_v33 = vadd.f32 %v2810_v32, %v2809_v29  ;;  %v2812_v34 = vpop.f32.mrb[22].mxu0  ;;  %v2921_v35 = vpop.f32.mrb[20].mxu1 }
 0x120   :  { %v2813_v36 = vpop.f32.mrb[23].mxu0  ;;  %v2922_v39 = vpop.f32.mrb[21].mxu1 }
 0x121   :  { %v893_v37 = vadd.f32 %v2811_v33, %v4452_v46  ;;  %v2814_v38 = vadd.f32 %v2813_v36, %v2812_v34  ;;  %v2923_v40 = vadd.f32 %v2922_v39, %v2921_v35  ;;  %v2924_v41 = vpop.f32.mrb[22].mxu1 }
 0x122   :  { %v2925_v43 = vpop.f32.mrb[23].mxu1 }
 0x123   :  { %v896_v42 = vadd.f32 %v2814_v38, %v4452_v46  ;;  %v4543_v44 = vadd.f32 %v2923_v40, %v893_v37  ;;  %v2926_v45 = vadd.f32 %v2925_v43, %v2924_v41 }
 0x125   :  { %v2815_v47 = vpop.f32.mrb[24].mxu0  ;;  %v4545_v48 = vadd.f32 %v2926_v45, %v896_v42 }
 0x126   :  { %v2816_v50 = vpop.f32.mrb[25].mxu0 }
 0x127   :  { %v2817_v51 = vadd.f32 %v2816_v50, %v2815_v47  ;;  %v2818_v52 = vpop.f32.mrb[26].mxu0  ;;  %v2927_v53 = vpop.f32.mrb[24].mxu1 }
 0x128   :  { %v2819_v55 = vpop.f32.mrb[27].mxu0  ;;  %v2928_v58 = vpop.f32.mrb[25].mxu1 }
 0x129   :  { %v901_v56 = vadd.f32 %v2817_v51, %v4452_v46  ;;  %v2820_v57 = vadd.f32 %v2819_v55, %v2818_v52  ;;  %v2929_v59 = vadd.f32 %v2928_v58, %v2927_v53  ;;  %v2930_v60 = vpop.f32.mrb[26].mxu1 }
 0x12a   :  { %v2931_v62 = vpop.f32.mrb[27].mxu1 }
 0x12b   :  { %v904_v61 = vadd.f32 %v2820_v57, %v4452_v46  ;;  %v4549_v63 = vadd.f32 %v2929_v59, %v901_v56  ;;  %v2932_v0 = vadd.f32 %v2931_v62, %v2930_v60 }
 0x12d   :  { %v2821_v2 = vpop.f32.mrb[28].mxu0  ;;  %v4551_v3 = vadd.f32 %v2932_v0, %v904_v61 }
 0x12e   :  { %v2822_v4 = vpop.f32.mrb[29].mxu0 }
 0x12f   :  { %v2823_v5 = vadd.f32 %v2822_v4, %v2821_v2  ;;  %v2824_v7 = vpop.f32.mrb[30].mxu0  ;;  %v2933_v8 = vpop.f32.mrb[28].mxu1 }
 0x130   :  { %v2825_v10 = vpop.f32.mrb[31].mxu0  ;;  %v2934_v14 = vpop.f32.mrb[29].mxu1 }
 0x131   :  { %v909_v11 = vadd.f32 %v2823_v5, %v4452_v46  ;;  %v2826_v13 = vadd.f32 %v2825_v10, %v2824_v7  ;;  %v2935_v15 = vadd.f32 %v2934_v14, %v2933_v8  ;;  %v2936_v16 = vpop.f32.mrb[30].mxu1 }
 0x132   :  { %v2937_v18 = vpop.f32.mrb[31].mxu1 }
 0x133   :  { %v912_v17 = vadd.f32 %v2826_v13, %v4452_v46  ;;  %v4555_v19 = vadd.f32 %v2935_v15, %v909_v11  ;;  %v2938_v20 = vadd.f32 %v2937_v18, %v2936_v16 }
 0x135   :  { %v2827_v21 = vpop.f32.mrb[32].mxu0  ;;  %v4557_v22 = vadd.f32 %v2938_v20, %v912_v17 }
 0x136   :  { %v2828_v23 = vpop.f32.mrb[33].mxu0 }
 0x137   :  { %v2829_v24 = vadd.f32 %v2828_v23, %v2827_v21  ;;  %v2830_v26 = vpop.f32.mrb[34].mxu0  ;;  %v2939_v28 = vpop.f32.mrb[32].mxu1 }
 0x138   :  { %v2831_v29 = vpop.f32.mrb[35].mxu0  ;;  %v2940_v34 = vpop.f32.mrb[33].mxu1 }
 0x139   :  { %v917_v32 = vadd.f32 %v2829_v24, %v4452_v46  ;;  %v2832_v33 = vadd.f32 %v2831_v29, %v2830_v26  ;;  %v2941_v35 = vadd.f32 %v2940_v34, %v2939_v28  ;;  %v2942_v36 = vpop.f32.mrb[34].mxu1 }
 0x13a   :  { %v2943_v38 = vpop.f32.mrb[35].mxu1 }
 0x13b   :  { %v920_v37 = vadd.f32 %v2832_v33, %v4452_v46  ;;  %v4561_v39 = vadd.f32 %v2941_v35, %v917_v32  ;;  %v2944_v40 = vadd.f32 %v2943_v38, %v2942_v36 }
 0x13d   :  { %v2833_v41 = vpop.f32.mrb[36].mxu0  ;;  %v4563_v42 = vadd.f32 %v2944_v40, %v920_v37 }
 0x13e   :  { %v2834_v43 = vpop.f32.mrb[37].mxu0 }
 0x13f   :  { %v2835_v45 = vadd.f32 %v2834_v43, %v2833_v41  ;;  %v2836_v47 = vpop.f32.mrb[38].mxu0  ;;  %v2945_v50 = vpop.f32.mrb[36].mxu1 }
 0x140   :  { %v2837_v51 = vpop.f32.mrb[39].mxu0  ;;  %v2946_v55 = vpop.f32.mrb[37].mxu1 }
 0x141   :  { %v925_v52 = vadd.f32 %v2835_v45, %v4452_v46  ;;  %v2838_v53 = vadd.f32 %v2837_v51, %v2836_v47  ;;  %v2947_v56 = vadd.f32 %v2946_v55, %v2945_v50  ;;  %v2948_v57 = vpop.f32.mrb[38].mxu1 }
 0x142   :  { %v2949_v59 = vpop.f32.mrb[39].mxu1 }
 0x143   :  { %v928_v58 = vadd.f32 %v2838_v53, %v4452_v46  ;;  %v4567_v60 = vadd.f32 %v2947_v56, %v925_v52  ;;  %v2950_v61 = vadd.f32 %v2949_v59, %v2948_v57 }
 0x145   :  { %v2839_v62 = vpop.f32.mrb[40].mxu0  ;;  %v4569_v0 = vadd.f32 %v2950_v61, %v928_v58 }
 0x146   :  { %v2840_v2 = vpop.f32.mrb[41].mxu0 }
 0x147   :  { %v2841_v4 = vadd.f32 %v2840_v2, %v2839_v62  ;;  %v2842_v5 = vpop.f32.mrb[42].mxu0  ;;  %v2951_v7 = vpop.f32.mrb[40].mxu1 }
 0x148   :  { %v2843_v8 = vpop.f32.mrb[43].mxu0  ;;  %v2952_v13 = vpop.f32.mrb[41].mxu1 }
 0x149   :  { %v933_v10 = vadd.f32 %v2841_v4, %v4452_v46  ;;  %v2844_v11 = vadd.f32 %v2843_v8, %v2842_v5  ;;  %v2953_v14 = vadd.f32 %v2952_v13, %v2951_v7  ;;  %v2954_v15 = vpop.f32.mrb[42].mxu1 }
 0x14a   :  { %v2955_v17 = vpop.f32.mrb[43].mxu1 }
 0x14b   :  { %v936_v16 = vadd.f32 %v2844_v11, %v4452_v46  ;;  %v4573_v18 = vadd.f32 %v2953_v14, %v933_v10  ;;  %v2956_v20 = vadd.f32 %v2955_v17, %v2954_v15 }
 0x14d   :  { %v2845_v21 = vpop.f32.mrb[44].mxu0  ;;  %v4575_v23 = vadd.f32 %v2956_v20, %v936_v16 }
 0x14e   :  { %v2846_v24 = vpop.f32.mrb[45].mxu0 }
 0x14f   :  { %v2847_v26 = vadd.f32 %v2846_v24, %v2845_v21  ;;  %v2848_v28 = vpop.f32.mrb[46].mxu0  ;;  %v2957_v29 = vpop.f32.mrb[44].mxu1 }
 0x150   :  { %v2849_v32 = vpop.f32.mrb[47].mxu0  ;;  %v2958_v35 = vpop.f32.mrb[45].mxu1 }
 0x151   :  { %v941_v33 = vadd.f32 %v2847_v26, %v4452_v46  ;;  %v2850_v34 = vadd.f32 %v2849_v32, %v2848_v28  ;;  %v2959_v36 = vadd.f32 %v2958_v35, %v2957_v29  ;;  %v2960_v37 = vpop.f32.mrb[46].mxu1 }
 0x152   :  { %v2961_v40 = vpop.f32.mrb[47].mxu1 }
 0x153   :  { %v944_v38 = vadd.f32 %v2850_v34, %v4452_v46  ;;  %v4579_v41 = vadd.f32 %v2959_v36, %v941_v33  ;;  %v2962_v43 = vadd.f32 %v2961_v40, %v2960_v37 }
 0x155   :  { %v2851_v45 = vpop.f32.mrb[48].mxu0  ;;  %v4581_v47 = vadd.f32 %v2962_v43, %v944_v38 }
 0x156   :  { %v2852_v50 = vpop.f32.mrb[49].mxu0 }
 0x157   :  { %v2853_v51 = vadd.f32 %v2852_v50, %v2851_v45  ;;  %v2854_v52 = vpop.f32.mrb[50].mxu0  ;;  %v2963_v53 = vpop.f32.mrb[48].mxu1 }
 0x158   :  { %v2855_v55 = vpop.f32.mrb[51].mxu0  ;;  %v2964_v58 = vpop.f32.mrb[49].mxu1 }
 0x159   :  { %v949_v56 = vadd.f32 %v2853_v51, %v4452_v46  ;;  %v2856_v57 = vadd.f32 %v2855_v55, %v2854_v52  ;;  %v2965_v59 = vadd.f32 %v2964_v58, %v2963_v53  ;;  %v2966_v61 = vpop.f32.mrb[50].mxu1 }
 0x15a   :  { %v2967_v2 = vpop.f32.mrb[51].mxu1 }
 0x15b   :  { %v952_v62 = vadd.f32 %v2856_v57, %v4452_v46  ;;  %v4585_v4 = vadd.f32 %v2965_v59, %v949_v56  ;;  %v2968_v5 = vadd.f32 %v2967_v2, %v2966_v61 }
 0x15d   :  { %v2857_v7 = vpop.f32.mrb[52].mxu0  ;;  %v4587_v8 = vadd.f32 %v2968_v5, %v952_v62 }
 0x15e   :  { %v2858_v10 = vpop.f32.mrb[53].mxu0 }
 0x15f   :  { %v2859_v11 = vadd.f32 %v2858_v10, %v2857_v7  ;;  %v2860_v13 = vpop.f32.mrb[54].mxu0  ;;  %v2969_v14 = vpop.f32.mrb[52].mxu1 }
 0x160   :  { %v2861_v15 = vpop.f32.mrb[55].mxu0  ;;  %v2970_v20 = vpop.f32.mrb[53].mxu1 }
 0x161   :  { %v957_v16 = vadd.f32 %v2859_v11, %v4452_v46  ;;  %v2862_v17 = vadd.f32 %v2861_v15, %v2860_v13  ;;  %v2971_v21 = vadd.f32 %v2970_v20, %v2969_v14  ;;  %v2972_v24 = vpop.f32.mrb[54].mxu1 }
 0x162   :  { %v2973_v28 = vpop.f32.mrb[55].mxu1 }
 0x163   :  { %v960_v26 = vadd.f32 %v2862_v17, %v4452_v46  ;;  %v4591_v29 = vadd.f32 %v2971_v21, %v957_v16  ;;  %v2974_v32 = vadd.f32 %v2973_v28, %v2972_v24 }
 0x165   :  { %v2863_v33 = vpop.f32.mrb[56].mxu0  ;;  %v4593_v34 = vadd.f32 %v2974_v32, %v960_v26 }
 0x166   :  { %v2864_v35 = vpop.f32.mrb[57].mxu0 }
 0x167   :  { %v2865_v36 = vadd.f32 %v2864_v35, %v2863_v33  ;;  %v2866_v37 = vpop.f32.mrb[58].mxu0  ;;  %v2975_v38 = vpop.f32.mrb[56].mxu1 }
 0x168   :  { %v2867_v40 = vpop.f32.mrb[59].mxu0  ;;  %v2976_v50 = vpop.f32.mrb[57].mxu1 }
 0x169   :  { %v965_v43 = vadd.f32 %v2865_v36, %v4452_v46  ;;  %v2868_v45 = vadd.f32 %v2867_v40, %v2866_v37  ;;  %v2977_v51 = vadd.f32 %v2976_v50, %v2975_v38  ;;  %v2978_v52 = vpop.f32.mrb[58].mxu1 }
 0x16a   :  { %v2979_v55 = vpop.f32.mrb[59].mxu1 }
 0x16b   :  { %v968_v53 = vadd.f32 %v2868_v45, %v4452_v46  ;;  %v4597_v56 = vadd.f32 %v2977_v51, %v965_v43  ;;  %v2980_v57 = vadd.f32 %v2979_v55, %v2978_v52  ;;  %v3426_v51 = vld [vmem:[%s5131_s5] sm:$0xff]   ;;  %v3427_v52 = vld [vmem:[%s5131_s5 + $0x8] sm:$0xff]  }
 0x16c   :  { %3270 = vmatprep.subr.bf16.mxu0 %v3426_v51 }
 0x16d   :  { %v2869_v58 = vpop.f32.mrb[60].mxu0  ;;  %v4599_v59 = vadd.f32 %v2980_v57, %v968_v53  ;;  %3271 = vmatpush3.bf16.msra.mxu0 %v3426_v51 }
 0x16e   :  { %v2870_v61 = vpop.f32.mrb[61].mxu0  ;;  %3272 = vmatprep.subr.bf16.mxu0 %v3427_v52 }
 0x16f   :  { %v2871_v62 = vadd.f32 %v2870_v61, %v2869_v58  ;;  %v2872_v2 = vpop.f32.mrb[62].mxu0  ;;  %v2981_v5 = vpop.f32.mrb[60].mxu1 }
 0x170   :  { %v2873_v7 = vpop.f32.mrb[63].mxu0  ;;  %v2982_v13 = vpop.f32.mrb[61].mxu1 }
 0x171   :  { %v973_v10 = vadd.f32 %v2871_v62, %v4452_v46  ;;  %v2874_v11 = vadd.f32 %v2873_v7, %v2872_v2  ;;  %v2983_v14 = vadd.f32 %v2982_v13, %v2981_v5  ;;  %v2984_v15 = vpop.f32.mrb[62].mxu1  ;;  %3273 = vmatpush3.bf16.msra.mxu0 %v3427_v52 }
 0x172   :  { %v2985_v17 = vpop.f32.mrb[63].mxu1 }
 0x173   :  { %v976_v16 = vadd.f32 %v2874_v11, %v4452_v46  ;;  %v4603_v20 = vadd.f32 %v2983_v14, %v973_v10  ;;  %v2986_v21 = vadd.f32 %v2985_v17, %v2984_v15 }
 0x175   :  { %v3003_v24 = vpop.f32.mrb[64].mxu0  ;;  %v4605_v26 = vadd.f32 %v2986_v21, %v976_v16  ;;  %v3429_v21 = vld [vmem:[%s5131_s5 + $0x18] sm:$0xff]  }
 0x176   :  { %v3004_v28 = vpop.f32.mrb[65].mxu0 }
 0x177   :  { %v3005_v32 = vadd.f32 %v3004_v28, %v3003_v24  ;;  %v3006_v33 = vpop.f32.mrb[66].mxu0  ;;  %v3192_v36 = vpop.f32.mrb[64].mxu1 }
 0x178   :  { %v3007_v35 = vpop.f32.mrb[67].mxu0  ;;  %v1335_v40 = vpop.f32.mrb[65].mxu1 }
 0x179   :  { %v3008_v37 = vadd.f32 %v3007_v35, %v3006_v33  ;;  %v1175_v38 = vadd.f32 %v3005_v32, %v4468_v1  ;;  %v3193_v43 = vpop.f32.mrb[66].mxu1 }
 0x17a   :  { %v1338_v50 = vpop.f32.mrb[67].mxu1 }
 0x17b   :  { %v1336_v45 = vadd.f32 %v1335_v40, %v1175_v38  ;;  %v1178_v46 = vadd.f32 %v3008_v37, %v4476_v6  ;;  %v3428_v6 = vld [vmem:[%s5131_s5 + $0x10] sm:$0xff]  }
 0x17c   :  { %3274 = vmatprep.subr.bf16.mxu0 %v3428_v6 }
 0x17d   :  { %v1339_v53 = vadd.f32 %v1338_v50, %v1178_v46  ;;  %v3009_v55 = vpop.f32.mrb[68].mxu0  ;;  %v1462_v1 = vmax.f32 %v1336_v45, 0.0  ;;  %3275 = vmatpush3.bf16.msra.mxu0 %v3428_v6 }
 0x17e   :  { %v3010_v57 = vpop.f32.mrb[69].mxu0  ;;  %3276 = vmatprep.subr.bf16.mxu0 %v3429_v21 }
 0x17f   :  { %v1463_v58 = vmax.f32 %v1339_v53, 0.0  ;;  %v3011_v61 = vadd.f32 %v3010_v57, %v3009_v55  ;;  %v3012_v62 = vpop.f32.mrb[70].mxu0  ;;  %v3196_v5 = vpop.f32.mrb[68].mxu1  ;;  %v3431_v55 = vld [vmem:[%s5131_s5 + $0x28] sm:$0xff]  }
 0x180   :  { %v3013_v2 = vpop.f32.mrb[71].mxu0  ;;  %v1351_v13 = vpop.f32.mrb[69].mxu1 }
 0x181   :  { %v1494_v7 = vpack.c.bf16 %v1463_v58, %v1462_v1  ;;  %v1183_v10 = vadd.f32 %v3011_v61, %v4492_v25  ;;  %v3014_v11 = vadd.f32 %v3013_v2, %v3012_v62  ;;  %v3197_v14 = vpop.f32.mrb[70].mxu1  ;;  %3277 = vmatpush3.bf16.msra.mxu0 %v3429_v21 }
 0x182   :  { %v1354_v17 = vpop.f32.mrb[71].mxu1 }
 0x183   :  { %v1344_v15 = vadd.f32 %v3192_v36, %v1183_v10  ;;  %v1186_v16 = vadd.f32 %v3014_v11, %v4500_v30  ;;  %3238 = vmatprep.mubr.bf16.mxu1 %v1494_v7  ;;  %v3430_v30 = vld [vmem:[%s5131_s5 + $0x20] sm:$0xff]  }
 0x184   :  { %3278 = vmatprep.subr.bf16.mxu0 %v3430_v30 }
 0x185   :  { %v1347_v24 = vadd.f32 %v3193_v43, %v1186_v16  ;;  %v3015_v28 = vpop.f32.mrb[72].mxu0  ;;  %v1464_v33 = vmax.f32 %v1344_v15, 0.0  ;;  %3279 = vmatpush3.bf16.msra.mxu0 %v3430_v30 }
 0x186   :  { %v3016_v32 = vpop.f32.mrb[73].mxu0  ;;  %3280 = vmatprep.subr.bf16.mxu0 %v3431_v55 }
 0x187   :  { %v1465_v25 = vmax.f32 %v1347_v24, 0.0  ;;  %v3017_v35 = vadd.f32 %v3016_v32, %v3015_v28  ;;  %v3018_v37 = vpop.f32.mrb[74].mxu0  ;;  %v4626_v38 = vpop.f32.mrb[72].mxu1 }
 0x188   :  { %v3019_v36 = vpop.f32.mrb[75].mxu0  ;;  %v1367_v43 = vpop.f32.mrb[73].mxu1 }
 0x189   :  { %v1495_v40 = vpack.c.bf16 %v1465_v25, %v1464_v33  ;;  %v3020_v45 = vadd.f32 %v3019_v36, %v3018_v37  ;;  %v1191_v46 = vadd.f32 %v3017_v35, %v4513_v49  ;;  %v4629_v50 = vpop.f32.mrb[74].mxu1  ;;  %3281 = vmatpush3.bf16.msra.mxu0 %v3431_v55 }
 0x18a   :  { %v1370_v53 = vpop.f32.mrb[75].mxu1 }
 0x18b   :  { %v1352_v51 = vadd.f32 %v1351_v13, %v1191_v46  ;;  %3239 = vmatmul.mubr.bf16.vlgmr.msra.gmra.mrb[96].mxu1 %v1495_v40  ;;  %v1194_v52 = vadd.f32 %v3020_v45, %v4521_v54 }
 0x18d   :  { %v1355_v57 = vadd.f32 %v1354_v17, %v1194_v52  ;;  %v3021_v1 = vpop.f32.mrb[76].mxu0  ;;  %v1466_v61 = vmax.f32 %v1352_v51, 0.0 }
 0x18e   :  { %v3022_v58 = vpop.f32.mrb[77].mxu0 }
 0x18f   :  { %v1467_v49 = vmax.f32 %v1355_v57, 0.0  ;;  %v3023_v62 = vadd.f32 %v3022_v58, %v3021_v1  ;;  %v3024_v6 = vpop.f32.mrb[78].mxu0  ;;  %v4635_v7 = vpop.f32.mrb[76].mxu1 }
 0x190   :  { %v3025_v2 = vpop.f32.mrb[79].mxu0  ;;  %v1383_v13 = vpop.f32.mrb[77].mxu1 }
 0x191   :  { %v1496_v10 = vpack.c.bf16 %v1467_v49, %v1466_v61  ;;  %v1199_v54 = vadd.f32 %v3023_v62, %v4531_v9  ;;  %v3026_v11 = vadd.f32 %v3025_v2, %v3024_v6  ;;  %v4638_v15 = vpop.f32.mrb[78].mxu1 }
 0x192   :  { %v1386_v21 = vpop.f32.mrb[79].mxu1 }
 0x193   :  { %v1360_v16 = vadd.f32 %v3196_v5, %v1199_v54  ;;  %v1202_v17 = vadd.f32 %v3026_v11, %v4533_v12  ;;  %3242 = vmatprep.mubr.bf16.mxu1 %v1496_v10 }
 0x195   :  { %v1363_v24 = vadd.f32 %v3197_v14, %v1202_v17  ;;  %v3027_v28 = vpop.f32.mrb[80].mxu0  ;;  %v1468_v33 = vmax.f32 %v1360_v16, 0.0 }
 0x196   :  { %v3028_v32 = vpop.f32.mrb[81].mxu0 }
 0x197   :  { %v1469_v25 = vmax.f32 %v1363_v24, 0.0  ;;  %v3029_v35 = vadd.f32 %v3028_v32, %v3027_v28  ;;  %v3030_v37 = vpop.f32.mrb[82].mxu0  ;;  %v4641_v36 = vpop.f32.mrb[80].mxu1 }
 0x198   :  { %v3031_v30 = vpop.f32.mrb[83].mxu0  ;;  %v4644_v46 = vpop.f32.mrb[81].mxu1 }
 0x199   :  { %v3032_v9 = vadd.f32 %v3031_v30, %v3030_v37  ;;  %v1207_v40 = vadd.f32 %v3029_v35, %v4537_v27  ;;  %v1497_v45 = vpack.c.bf16 %v1469_v25, %v1468_v33  ;;  %v4646_v5 = vpop.f32.mrb[82].mxu1 }
 0x19a   :  { %v4649_v51 = vpop.f32.mrb[83].mxu1 }
 0x19b   :  { %v1368_v12 = vadd.f32 %v1367_v43, %v1207_v40  ;;  %3243 = vmatmul.mubr.bf16.gmra.mrb[100].mxu1 %v1497_v45  ;;  %v1210_v14 = vadd.f32 %v3032_v9, %v4539_v31 }
 0x19d   :  { %v1371_v52 = vadd.f32 %v1370_v53, %v1210_v14  ;;  %v3033_v55 = vpop.f32.mrb[84].mxu0  ;;  %v1470_v1 = vmax.f32 %v1368_v12, 0.0 }
 0x19e   :  { %v3034_v57 = vpop.f32.mrb[85].mxu0 }
 0x19f   :  { %v1471_v58 = vmax.f32 %v1371_v52, 0.0  ;;  %v3035_v61 = vadd.f32 %v3034_v57, %v3033_v55  ;;  %v3036_v49 = vpop.f32.mrb[86].mxu0  ;;  %v4651_v27 = vpop.f32.mrb[84].mxu1 }
 0x1a0   :  { %v3037_v62 = vpop.f32.mrb[87].mxu0  ;;  %v4654_v43 = vpop.f32.mrb[85].mxu1 }
 0x1a1   :  { %v1498_v6 = vpack.c.bf16 %v1471_v58, %v1470_v1  ;;  %v1215_v2 = vadd.f32 %v3035_v61, %v4543_v44  ;;  %v3038_v10 = vadd.f32 %v3037_v62, %v3036_v49  ;;  %v4656_v54 = vpop.f32.mrb[86].mxu1 }
 0x1a2   :  { %v4660_v11 = vpop.f32.mrb[87].mxu1 }
 0x1a3   :  { %v1376_v31 = vadd.f32 %v4626_v38, %v1215_v2  ;;  %v1218_v53 = vadd.f32 %v3038_v10, %v4545_v48  ;;  %3246 = vmatprep.mubr.bf16.mxu1 %v1498_v6 }
 0x1a5   :  { %v1379_v16 = vadd.f32 %v4629_v50, %v1218_v53  ;;  %v3039_v17 = vpop.f32.mrb[88].mxu0  ;;  %v1472_v28 = vmax.f32 %v1376_v31, 0.0 }
 0x1a6   :  { %v3040_v24 = vpop.f32.mrb[89].mxu0 }
 0x1a7   :  { %v1473_v32 = vmax.f32 %v1379_v16, 0.0  ;;  %v3041_v33 = vadd.f32 %v3040_v24, %v3039_v17  ;;  %v3042_v44 = vpop.f32.mrb[90].mxu0  ;;  %v4663_v35 = vpop.f32.mrb[88].mxu1 }
 0x1a8   :  { %v3043_v25 = vpop.f32.mrb[91].mxu0  ;;  %v4666_v9 = vpop.f32.mrb[89].mxu1 }
 0x1a9   :  { %v3044_v37 = vadd.f32 %v3043_v25, %v3042_v44  ;;  %v1223_v30 = vadd.f32 %v3041_v33, %v4549_v63  ;;  %v1499_v38 = vpack.c.bf16 %v1473_v32, %v1472_v28  ;;  %v4668_v48 = vpop.f32.mrb[90].mxu1 }
 0x1aa   :  { %v4671_v45 = vpop.f32.mrb[91].mxu1 }
 0x1ab   :  { %v1384_v40 = vadd.f32 %v1383_v13, %v1223_v30  ;;  %3247 = vmatmul.mubr.bf16.gmra.mrb[104].mxu1 %v1499_v38  ;;  %v1226_v50 = vadd.f32 %v3044_v37, %v4551_v3 }
 0x1ad   :  { %v1387_v12 = vadd.f32 %v1386_v21, %v1226_v50  ;;  %v3045_v14 = vpop.f32.mrb[92].mxu0  ;;  %v1474_v55 = vmax.f32 %v1384_v40, 0.0 }
 0x1ae   :  { %v3046_v52 = vpop.f32.mrb[93].mxu0 }
 0x1af   :  { %v1475_v57 = vmax.f32 %v1387_v12, 0.0  ;;  %v3047_v1 = vadd.f32 %v3046_v52, %v3045_v14  ;;  %v3048_v58 = vpop.f32.mrb[94].mxu0  ;;  %v4673_v63 = vpop.f32.mrb[92].mxu1 }
 0x1b0   :  { %v3049_v61 = vpop.f32.mrb[95].mxu0  ;;  %v4676_v13 = vpop.f32.mrb[93].mxu1 }
 0x1b1   :  { %v1500_v49 = vpack.c.bf16 %v1475_v57, %v1474_v55  ;;  %v1231_v62 = vadd.f32 %v3047_v1, %v4555_v19  ;;  %v3050_v6 = vadd.f32 %v3049_v61, %v3048_v58  ;;  %v4678_v2 = vpop.f32.mrb[94].mxu1 }
 0x1b2   :  { %v4682_v10 = vpop.f32.mrb[95].mxu1 }
 0x1b3   :  { %v1392_v3 = vadd.f32 %v4635_v7, %v1231_v62  ;;  %v1234_v21 = vadd.f32 %v3050_v6, %v4557_v22  ;;  %3250 = vmatprep.mubr.bf16.mxu1 %v1500_v49 }
 0x1b5   :  { %v1395_v31 = vadd.f32 %v4638_v15, %v1234_v21  ;;  %v3051_v53 = vpop.f32.mrb[96].mxu0  ;;  %v1476_v17 = vmax.f32 %v1392_v3, 0.0 }
 0x1b6   :  { %v3052_v16 = vpop.f32.mrb[97].mxu0 }
 0x1b7   :  { %v1477_v24 = vmax.f32 %v1395_v31, 0.0  ;;  %v3053_v28 = vadd.f32 %v3052_v16, %v3051_v53  ;;  %v3054_v19 = vpop.f32.mrb[98].mxu0 }
 0x1b8   :  { %v3055_v32 = vpop.f32.mrb[99].mxu0 }
 0x1b9   :  { %v3056_v33 = vadd.f32 %v3055_v32, %v3054_v19  ;;  %v1239_v44 = vadd.f32 %v3053_v28, %v4561_v39  ;;  %v1501_v25 = vpack.c.bf16 %v1477_v24, %v1476_v17 }
 0x1bb   :  { %v1400_v7 = vadd.f32 %v4644_v46, %v1239_v44  ;;  %3251 = vmatmul.mubr.bf16.gmra.mrb[108].mxu1 %v1501_v25  ;;  %v1242_v22 = vadd.f32 %v3056_v33, %v4563_v42 }
 0x1bd   :  { %v1403_v37 = vadd.f32 %v4649_v51, %v1242_v22  ;;  %v3057_v30 = vpop.f32.mrb[100].mxu0  ;;  %v1478_v38 = vmax.f32 %v1400_v7, 0.0 }
 0x1be   :  { %v3058_v15 = vpop.f32.mrb[101].mxu0 }
 0x1bf   :  { %v1479_v40 = vmax.f32 %v1403_v37, 0.0  ;;  %v3059_v50 = vadd.f32 %v3058_v15, %v3057_v30  ;;  %v3060_v12 = vpop.f32.mrb[102].mxu0 }
 0x1c0   :  { %v3061_v14 = vpop.f32.mrb[103].mxu0 }
 0x1c1   :  { %v1502_v52 = vpack.c.bf16 %v1479_v40, %v1478_v38  ;;  %v1247_v55 = vadd.f32 %v3059_v50, %v4567_v60  ;;  %v3062_v57 = vadd.f32 %v3061_v14, %v3060_v12 }
 0x1c3   :  { %v1408_v39 = vadd.f32 %v4641_v36, %v1247_v55  ;;  %v1250_v46 = vadd.f32 %v3062_v57, %v4569_v0  ;;  %3254 = vmatprep.mubr.bf16.mxu1 %v1502_v52 }
 0x1c5   :  { %v1411_v42 = vadd.f32 %v4646_v5, %v1250_v46  ;;  %v3063_v1 = vpop.f32.mrb[104].mxu0  ;;  %v1480_v58 = vmax.f32 %v1408_v39, 0.0  ;;  %v3432_v46 = vld [vmem:[%s5131_s5 + $0x30] sm:$0xff]  }
 0x1c6   :  { %v3064_v51 = vpop.f32.mrb[105].mxu0  ;;  %3282 = vmatprep.subr.bf16.mxu0 %v3432_v46 }
 0x1c7   :  { %v1481_v61 = vmax.f32 %v1411_v42, 0.0  ;;  %v3065_v49 = vadd.f32 %v3064_v51, %v3063_v1  ;;  %v3066_v62 = vpop.f32.mrb[106].mxu0  ;;  %3283 = vmatpush3.bf16.msra.mxu0 %v3432_v46  ;;  %v3433_v1 = vld [vmem:[%s5131_s5 + $0x38] sm:$0xff]  }
 0x1c8   :  { %v3067_v6 = vpop.f32.mrb[107].mxu0  ;;  %3284 = vmatprep.subr.bf16.mxu0 %v3433_v1 }
 0x1c9   :  { %v3068_v3 = vadd.f32 %v3067_v6, %v3066_v62  ;;  %v1255_v21 = vadd.f32 %v3065_v49, %v4573_v18  ;;  %v1503_v31 = vpack.c.bf16 %v1481_v61, %v1480_v58 }
 0x1cb   :  { %v1416_v60 = vadd.f32 %v4654_v43, %v1255_v21  ;;  %3255 = vmatmul.mubr.bf16.gmra.mrb[112].mxu1 %v1503_v31  ;;  %v1258_v36 = vadd.f32 %v3068_v3, %v4575_v23  ;;  %3285 = vmatpush3.bf16.msra.mxu0 %v3433_v1 }
 0x1cd   :  { %v1419_v0 = vadd.f32 %v4660_v11, %v1258_v36  ;;  %v3069_v53 = vpop.f32.mrb[108].mxu0  ;;  %v1482_v16 = vmax.f32 %v1416_v60, 0.0 }
 0x1ce   :  { %v3070_v5 = vpop.f32.mrb[109].mxu0 }
 0x1cf   :  { %v1483_v17 = vmax.f32 %v1419_v0, 0.0  ;;  %v3071_v24 = vadd.f32 %v3070_v5, %v3069_v53  ;;  %v3072_v28 = vpop.f32.mrb[110].mxu0 }
 0x1d0   :  { %v3073_v19 = vpop.f32.mrb[111].mxu0 }
 0x1d1   :  { %v1504_v32 = vpack.c.bf16 %v1483_v17, %v1482_v16  ;;  %v1263_v33 = vadd.f32 %v3071_v24, %v4579_v41  ;;  %v3074_v44 = vadd.f32 %v3073_v19, %v3072_v28 }
 0x1d3   :  { %v1424_v18 = vadd.f32 %v4651_v27, %v1263_v33  ;;  %v1266_v43 = vadd.f32 %v3074_v44, %v4581_v47  ;;  %3258 = vmatprep.mubr.bf16.mxu1 %v1504_v32 }
 0x1d5   :  { %v1427_v23 = vadd.f32 %v4656_v54, %v1266_v43  ;;  %v3075_v25 = vpop.f32.mrb[112].mxu0  ;;  %v1484_v7 = vmax.f32 %v1424_v18, 0.0  ;;  %v3434_v18 = vld [vmem:[%s5133_s7] sm:$0xff]  }
 0x1d6   :  { %v3076_v11 = vpop.f32.mrb[113].mxu0  ;;  %3318 = vmatprep.subr.bf16.mxu1 %v3434_v18 }
 0x1d7   :  { %v1485_v22 = vmax.f32 %v1427_v23, 0.0  ;;  %v3077_v37 = vadd.f32 %v3076_v11, %v3075_v25  ;;  %v3078_v30 = vpop.f32.mrb[114].mxu0  ;;  %3319 = vmatpush3.bf16.msra.mxu1 %v3434_v18 }
 0x1d8   :  { %v3079_v15 = vpop.f32.mrb[115].mxu0 }
 0x1d9   :  { %v3080_v38 = vadd.f32 %v3079_v15, %v3078_v30  ;;  %v1271_v40 = vadd.f32 %v3077_v37, %v4585_v4  ;;  %v1505_v50 = vpack.c.bf16 %v1485_v22, %v1484_v7  ;;  %v3437_v37 = vld [vmem:[%s5133_s7 + $0x18] sm:$0xff]  }
 0x1db   :  { %v1432_v41 = vadd.f32 %v4666_v9, %v1271_v40  ;;  %3259 = vmatmul.mubr.bf16.gmra.mrb[116].mxu1 %v1505_v50  ;;  %v1274_v27 = vadd.f32 %v3080_v38, %v4587_v8 }
 0x1dd   :  { %v1435_v47 = vadd.f32 %v4671_v45, %v1274_v27  ;;  %v3081_v12 = vpop.f32.mrb[116].mxu0  ;;  %v1486_v14 = vmax.f32 %v1432_v41, 0.0  ;;  %v3438_v27 = vld [vmem:[%s5133_s7 + $0x20] sm:$0xff]  }
 0x1de   :  { %v3082_v54 = vpop.f32.mrb[117].mxu0 }
 0x1df   :  { %v1487_v52 = vmax.f32 %v1435_v47, 0.0  ;;  %v3083_v55 = vadd.f32 %v3082_v54, %v3081_v12  ;;  %v3084_v57 = vpop.f32.mrb[118].mxu0  ;;  %v3439_v12 = vld [vmem:[%s5133_s7 + $0x28] sm:$0xff]  }
 0x1e0   :  { %v3085_v39 = vpop.f32.mrb[119].mxu0 }
 0x1e1   :  { %v1506_v4 = vpack.c.bf16 %v1487_v52, %v1486_v14  ;;  %v1279_v42 = vadd.f32 %v3083_v55, %v4591_v29  ;;  %v3086_v9 = vadd.f32 %v3085_v39, %v3084_v57 }
 0x1e3   :  { %v1440_v8 = vadd.f32 %v4663_v35, %v1279_v42  ;;  %v1282_v45 = vadd.f32 %v3086_v9, %v4593_v34  ;;  %3262 = vmatprep.mubr.bf16.mxu1 %v1506_v4 }
 0x1e5   :  { %v1443_v51 = vadd.f32 %v4668_v48, %v1282_v45  ;;  %v3087_v58 = vpop.f32.mrb[120].mxu0  ;;  %v1488_v49 = vmax.f32 %v1440_v8, 0.0 }
 0x1e6   :  { %v3088_v61 = vpop.f32.mrb[121].mxu0 }
 0x1e7   :  { %v1489_v62 = vmax.f32 %v1443_v51, 0.0  ;;  %v3089_v29 = vadd.f32 %v3088_v61, %v3087_v58  ;;  %v3090_v6 = vpop.f32.mrb[122].mxu0 }
 0x1e8   :  { %v3091_v3 = vpop.f32.mrb[123].mxu0 }
 0x1e9   :  { %v3092_v35 = vadd.f32 %v3091_v3, %v3090_v6  ;;  %v1287_v34 = vadd.f32 %v3089_v29, %v4597_v56  ;;  %v1507_v21 = vpack.c.bf16 %v1489_v62, %v1488_v49 }
 0x1eb   :  { %v1448_v31 = vadd.f32 %v4676_v13, %v1287_v34  ;;  %3263 = vmatmul.mubr.bf16.gmra.mrb[120].mxu1 %v1507_v21  ;;  %v1290_v60 = vadd.f32 %v3092_v35, %v4599_v59 }
 0x1ed   :  { %v1451_v48 = vadd.f32 %v4682_v10, %v1290_v60  ;;  %v3093_v36 = vpop.f32.mrb[124].mxu0  ;;  %v1490_v53 = vmax.f32 %v1448_v31, 0.0 }
 0x1ee   :  { %v3094_v0 = vpop.f32.mrb[125].mxu0 }
 0x1ef   :  { %v1491_v5 = vmax.f32 %v1451_v48, 0.0  ;;  %v3095_v16 = vadd.f32 %v3094_v0, %v3093_v36  ;;  %v3096_v17 = vpop.f32.mrb[126].mxu0 }
 0x1f0   :  { %v3097_v24 = vpop.f32.mrb[127].mxu0 }
 0x1f1   :  { %v1508_v28 = vpack.c.bf16 %v1491_v5, %v1490_v53  ;;  %v1295_v19 = vadd.f32 %v3095_v16, %v4603_v20  ;;  %v3098_v32 = vadd.f32 %v3097_v24, %v3096_v17  ;;  %v3435_v20 = vld [vmem:[%s5133_s7 + $0x8] sm:$0xff]  }
 0x1f2   :  { %3320 = vmatprep.subr.bf16.mxu1 %v3435_v20 }
 0x1f3   :  { %v1456_v56 = vadd.f32 %v4673_v63, %v1295_v19  ;;  %v1298_v13 = vadd.f32 %v3098_v32, %v4605_v26  ;;  %3266 = vmatprep.mubr.bf16.mxu1 %v1508_v28  ;;  %v4732_v26 = vld [vmem:[%s5130_s4] ss:$0 sm:$0xff]  ;;  %v3436_v63 = vld [vmem:[%s5133_s7 + $0x10] sm:$0xff]   ;;  %3321 = vmatpush3.bf16.msra.mxu1 %v3435_v20 }
 0x1f4   :  { %3322 = vmatprep.subr.bf16.mxu1 %v3436_v63 }
 0x1f5   :  { %v1459_v59 = vadd.f32 %v4678_v2, %v1298_v13  ;;  %v1492_v33 = vmax.f32 %v1456_v56, 0.0 }
 0x1f7   :  { %v1493_v10 = vmax.f32 %v1459_v59, 0.0  ;;  %3323 = vmatpush3.bf16.msra.mxu1 %v3436_v63 }
 0x1f8   :  { %3324 = vmatprep.subr.bf16.mxu1 %v3437_v37 }
 0x1f9   :  { %v1509_v44 = vpack.c.bf16 %v1493_v10, %v1492_v33 }
 0x1fb   :  { %3267 = vmatmul.mubr.bf16.gmra.mrb[124].mxu1 %v1509_v44 }
 0x1fc   :  { %3325 = vmatpush3.bf16.msra.mxu1 %v3437_v37 }
 0x1fd   :  { %3326 = vmatprep.subr.bf16.mxu1 %v3438_v27 }
 0x200   :  { %3327 = vmatpush3.bf16.msra.mxu1 %v3438_v27 }
 0x201   :  { %3328 = vmatprep.subr.bf16.mxu1 %v3439_v12 }
 0x204   :  { %3329 = vmatpush3.bf16.msra.mxu1 %v3439_v12 }
 0x25e   :  { %v3240_v2 = vpop.f32.mrb[96].mxu1 }
 0x25f   :  { %v1624_v43 = vadd.f32 %v3240_v2, %v4732_v26  ;;  %v1615_v23 = vpop.f32.mrb[97].mxu1 }
 0x260   :  { %v1616_v25 = vadd.f32 %v4732_v26, %v1615_v23  ;;  %v3241_v11 = vpop.f32.mrb[98].mxu1 }
 0x261   :  { %v1627_v7 = vadd.f32 %v3241_v11, %v4732_v26  ;;  %v1618_v22 = vpop.f32.mrb[99].mxu1  ;;  %v1744_v15 = vmax.f32 %v1624_v43, 0.0 }
 0x262   :  { %v1619_v30 = vadd.f32 %v4732_v26, %v1618_v22  ;;  %v1742_v40 = vmax.f32 %v1616_v25, 0.0 }
 0x263   :  { %v1745_v38 = vmax.f32 %v1627_v7, 0.0 }
 0x264   :  { %v1743_v50 = vmax.f32 %v1619_v30, 0.0 }
 0x265   :  { %v1775_v41 = vpack.c.bf16 %v1745_v38, %v1744_v15 }
 0x266   :  { %v1774_v47 = vpack.c.bf16 %v1743_v50, %v1742_v40 }
 0x268   :  { %3286 = vmatprep.mubr.bf16.mxu0 %v1774_v47 }
 0x269   :  { %3287 = vmatmul.mubr.bf16.vlgmr.msra.gmra.mrb[128].mxu0 %v1775_v41 }
 0x26e   :  { %v3244_v54 = vpop.f32.mrb[100].mxu1 }
 0x26f   :  { %v1640_v14 = vadd.f32 %v3244_v54, %v4732_v26  ;;  %v1631_v52 = vpop.f32.mrb[101].mxu1 }
 0x270   :  { %v1632_v55 = vadd.f32 %v4732_v26, %v1631_v52  ;;  %v3245_v57 = vpop.f32.mrb[102].mxu1 }
 0x271   :  { %v1643_v39 = vadd.f32 %v3245_v57, %v4732_v26  ;;  %v1634_v46 = vpop.f32.mrb[103].mxu1  ;;  %v1748_v42 = vmax.f32 %v1640_v14, 0.0 }
 0x272   :  { %v1635_v4 = vadd.f32 %v4732_v26, %v1634_v46  ;;  %v1746_v8 = vmax.f32 %v1632_v55, 0.0 }
 0x273   :  { %v1749_v9 = vmax.f32 %v1643_v39, 0.0 }
 0x274   :  { %v1747_v45 = vmax.f32 %v1635_v4, 0.0 }
 0x275   :  { %v1777_v1 = vpack.c.bf16 %v1749_v9, %v1748_v42  ;;  %v3440_v42 = vld [vmem:[%s5133_s7 + $0x30] sm:$0xff]  }
 0x276   :  { %v1776_v51 = vpack.c.bf16 %v1747_v45, %v1746_v8  ;;  %3330 = vmatprep.subr.bf16.mxu1 %v3440_v42 }
 0x277   :  { %3331 = vmatpush3.bf16.msra.mxu1 %v3440_v42 }
 0x278   :  { %3290 = vmatprep.mubr.bf16.mxu0 %v1776_v51 }
 0x279   :  { %3291 = vmatmul.mubr.bf16.gmra.mrb[132].mxu0 %v1777_v1 }
 0x27e   :  { %v3248_v58 = vpop.f32.mrb[104].mxu1 }
 0x27f   :  { %v1656_v61 = vadd.f32 %v3248_v58, %v4732_v26  ;;  %v1647_v49 = vpop.f32.mrb[105].mxu1 }
 0x280   :  { %v1648_v62 = vadd.f32 %v4732_v26, %v1647_v49  ;;  %v3249_v29 = vpop.f32.mrb[106].mxu1  ;;  %v3441_v49 = vld [vmem:[%s5133_s7 + $0x38] sm:$0xff]  }
 0x281   :  { %v1659_v6 = vadd.f32 %v3249_v29, %v4732_v26  ;;  %v1650_v3 = vpop.f32.mrb[107].mxu1  ;;  %v1752_v34 = vmax.f32 %v1656_v61, 0.0  ;;  %3332 = vmatprep.subr.bf16.mxu1 %v3441_v49 }
 0x282   :  { %v1651_v35 = vadd.f32 %v4732_v26, %v1650_v3  ;;  %v1750_v31 = vmax.f32 %v1648_v62, 0.0  ;;  %3333 = vmatpush3.bf16.msra.mxu1 %v3441_v49 }
 0x283   :  { %v1753_v21 = vmax.f32 %v1659_v6, 0.0 }
 0x284   :  { %v1751_v60 = vmax.f32 %v1651_v35, 0.0 }
 0x285   :  { %v1779_v48 = vpack.c.bf16 %v1753_v21, %v1752_v34 }
 0x286   :  { %v1778_v36 = vpack.c.bf16 %v1751_v60, %v1750_v31 }
 0x288   :  { %3294 = vmatprep.mubr.bf16.mxu0 %v1778_v36 }
 0x289   :  { %3295 = vmatmul.mubr.bf16.gmra.mrb[136].mxu0 %v1779_v48 }
 0x28e   :  { %v3252_v0 = vpop.f32.mrb[108].mxu1 }
 0x28f   :  { %v1672_v53 = vadd.f32 %v3252_v0, %v4732_v26  ;;  %v1663_v5 = vpop.f32.mrb[109].mxu1 }
 0x290   :  { %v1664_v16 = vadd.f32 %v4732_v26, %v1663_v5  ;;  %v3253_v17 = vpop.f32.mrb[110].mxu1 }
 0x291   :  { %v1675_v24 = vadd.f32 %v3253_v17, %v4732_v26  ;;  %v1666_v28 = vpop.f32.mrb[111].mxu1  ;;  %v1756_v32 = vmax.f32 %v1672_v53, 0.0 }
 0x292   :  { %v1667_v19 = vadd.f32 %v4732_v26, %v1666_v28  ;;  %v1754_v13 = vmax.f32 %v1664_v16, 0.0 }
 0x293   :  { %v1757_v56 = vmax.f32 %v1675_v24, 0.0 }
 0x294   :  { %v1755_v59 = vmax.f32 %v1667_v19, 0.0 }
 0x295   :  { %v1781_v33 = vpack.c.bf16 %v1757_v56, %v1756_v32  ;;  %v4787_v56 = vld [vmem:[%s5132_s6] ss:$0 sm:$0xff] }
 0x296   :  { %v1780_v10 = vpack.c.bf16 %v1755_v59, %v1754_v13 }
 0x298   :  { %3298 = vmatprep.mubr.bf16.mxu0 %v1780_v10 }
 0x299   :  { %3299 = vmatmul.mubr.bf16.gmra.mrb[140].mxu0 %v1781_v33 }
 0x29e   :  { %v3256_v44 = vpop.f32.mrb[112].mxu1 }
 0x29f   :  { %v1688_v18 = vadd.f32 %v3256_v44, %v4732_v26  ;;  %v1679_v20 = vpop.f32.mrb[113].mxu1 }
 0x2a0   :  { %v1680_v63 = vadd.f32 %v4732_v26, %v1679_v20  ;;  %v3257_v2 = vpop.f32.mrb[114].mxu1 }
 0x2a1   :  { %v1691_v43 = vadd.f32 %v3257_v2, %v4732_v26  ;;  %v1682_v23 = vpop.f32.mrb[115].mxu1  ;;  %v1760_v11 = vmax.f32 %v1688_v18, 0.0 }
 0x2a2   :  { %v1683_v25 = vadd.f32 %v4732_v26, %v1682_v23  ;;  %v1758_v22 = vmax.f32 %v1680_v63, 0.0 }
 0x2a3   :  { %v1761_v7 = vmax.f32 %v1691_v43, 0.0 }
 0x2a4   :  { %v1759_v37 = vmax.f32 %v1683_v25, 0.0 }
 0x2a5   :  { %v1783_v30 = vpack.c.bf16 %v1761_v7, %v1760_v11 }
 0x2a6   :  { %v1782_v15 = vpack.c.bf16 %v1759_v37, %v1758_v22 }
 0x2a8   :  { %3302 = vmatprep.mubr.bf16.mxu0 %v1782_v15 }
 0x2a9   :  { %3303 = vmatmul.mubr.bf16.gmra.mrb[144].mxu0 %v1783_v30 }
 0x2ae   :  { %v3260_v38 = vpop.f32.mrb[116].mxu1 }
 0x2af   :  { %v1704_v40 = vadd.f32 %v3260_v38, %v4732_v26  ;;  %v1695_v50 = vpop.f32.mrb[117].mxu1 }
 0x2b0   :  { %v1696_v41 = vadd.f32 %v4732_v26, %v1695_v50  ;;  %v3261_v27 = vpop.f32.mrb[118].mxu1 }
 0x2b1   :  { %v1707_v47 = vadd.f32 %v3261_v27, %v4732_v26  ;;  %v1698_v12 = vpop.f32.mrb[119].mxu1  ;;  %v1764_v14 = vmax.f32 %v1704_v40, 0.0 }
 0x2b2   :  { %v1699_v54 = vadd.f32 %v4732_v26, %v1698_v12  ;;  %v1762_v55 = vmax.f32 %v1696_v41, 0.0 }
 0x2b3   :  { %v1765_v52 = vmax.f32 %v1707_v47, 0.0 }
 0x2b4   :  { %v1763_v57 = vmax.f32 %v1699_v54, 0.0 }
 0x2b5   :  { %v1785_v39 = vpack.c.bf16 %v1765_v52, %v1764_v14 }
 0x2b6   :  { %v1784_v46 = vpack.c.bf16 %v1763_v57, %v1762_v55 }
 0x2b8   :  { %3306 = vmatprep.mubr.bf16.mxu0 %v1784_v46 }
 0x2b9   :  { %3307 = vmatmul.mubr.bf16.gmra.mrb[148].mxu0 %v1785_v39 }
 0x2be   :  { %v3264_v4 = vpop.f32.mrb[120].mxu1 }
 0x2bf   :  { %v1720_v9 = vadd.f32 %v3264_v4, %v4732_v26  ;;  %v1711_v8 = vpop.f32.mrb[121].mxu1 }
 0x2c0   :  { %v1712_v45 = vadd.f32 %v4732_v26, %v1711_v8  ;;  %v3265_v1 = vpop.f32.mrb[122].mxu1 }
 0x2c1   :  { %v1723_v51 = vadd.f32 %v3265_v1, %v4732_v26  ;;  %v1714_v58 = vpop.f32.mrb[123].mxu1  ;;  %v1768_v62 = vmax.f32 %v1720_v9, 0.0 }
 0x2c2   :  { %v1715_v61 = vadd.f32 %v4732_v26, %v1714_v58  ;;  %v1766_v6 = vmax.f32 %v1712_v45, 0.0 }
 0x2c3   :  { %v1769_v29 = vmax.f32 %v1723_v51, 0.0 }
 0x2c4   :  { %v1767_v3 = vmax.f32 %v1715_v61, 0.0 }
 0x2c5   :  { %v1787_v35 = vpack.c.bf16 %v1769_v29, %v1768_v62 }
 0x2c6   :  { %v1786_v34 = vpack.c.bf16 %v1767_v3, %v1766_v6 }
 0x2c8   :  { %3310 = vmatprep.mubr.bf16.mxu0 %v1786_v34 }
 0x2c9   :  { %3311 = vmatmul.mubr.bf16.gmra.mrb[152].mxu0 %v1787_v35 }
 0x2ce   :  { %v3268_v21 = vpop.f32.mrb[124].mxu1 }
 0x2cf   :  { %v1736_v31 = vadd.f32 %v3268_v21, %v4732_v26  ;;  %v1727_v60 = vpop.f32.mrb[125].mxu1 }
 0x2d0   :  { %v1728_v48 = vadd.f32 %v4732_v26, %v1727_v60  ;;  %v3269_v36 = vpop.f32.mrb[126].mxu1 }
 0x2d1   :  { %v1739_v0 = vadd.f32 %v3269_v36, %v4732_v26  ;;  %v1730_v53 = vpop.f32.mrb[127].mxu1  ;;  %v1772_v16 = vmax.f32 %v1736_v31, 0.0 }
 0x2d2   :  { %v1731_v5 = vadd.f32 %v4732_v26, %v1730_v53  ;;  %v1770_v24 = vmax.f32 %v1728_v48, 0.0 }
 0x2d3   :  { %v1773_v17 = vmax.f32 %v1739_v0, 0.0 }
 0x2d4   :  { %v1771_v28 = vmax.f32 %v1731_v5, 0.0 }
 0x2d5   :  { %v1789_v19 = vpack.c.bf16 %v1773_v17, %v1772_v16 }
 0x2d6   :  { %v1788_v32 = vpack.c.bf16 %v1771_v28, %v1770_v24 }
 0x2d8   :  { %3314 = vmatprep.mubr.bf16.mxu0 %v1788_v32 }
 0x2d9   :  { %3315 = vmatmul.mubr.bf16.gmra.mrb[156].mxu0 %v1789_v19 }
 0x33c   :  { %v3288_v13 = vpop.f32.mrb[128].mxu0 }
 0x33d   :  { %v1904_v59 = vadd.f32 %v3288_v13, %v4787_v56  ;;  %v1895_v33 = vpop.f32.mrb[129].mxu0 }
 0x33e   :  { %v1896_v10 = vadd.f32 %v4787_v56, %v1895_v33  ;;  %v3289_v26 = vpop.f32.mrb[130].mxu0 }
 0x33f   :  { %v1907_v44 = vadd.f32 %v3289_v26, %v4787_v56  ;;  %v1898_v18 = vpop.f32.mrb[131].mxu0  ;;  %v2024_v63 = vmax.f32 %v1904_v59, 0.0 }
 0x340   :  { %v1899_v20 = vadd.f32 %v4787_v56, %v1898_v18  ;;  %v2022_v43 = vmax.f32 %v1896_v10, 0.0 }
 0x341   :  { %v2025_v2 = vmax.f32 %v1907_v44, 0.0 }
 0x342   :  { %v2023_v23 = vmax.f32 %v1899_v20, 0.0 }
 0x343   :  { %v2055_v25 = vpack.c.bf16 %v2025_v2, %v2024_v63 }
 0x344   :  { %v2054_v11 = vpack.c.bf16 %v2023_v23, %v2022_v43 }
 0x346   :  { %3334 = vmatprep.mubr.bf16.mxu1 %v2054_v11 }
 0x347   :  { %3335 = vmatmul.mubr.bf16.vlgmr.msra.gmra.mrb[128].mxu1 %v2055_v25 }
 0x34c   :  { %v3292_v7 = vpop.f32.mrb[132].mxu0 }
 0x34d   :  { %v1920_v22 = vadd.f32 %v3292_v7, %v4787_v56  ;;  %v1911_v37 = vpop.f32.mrb[133].mxu0 }
 0x34e   :  { %v1912_v30 = vadd.f32 %v4787_v56, %v1911_v37  ;;  %v3293_v15 = vpop.f32.mrb[134].mxu0 }
 0x34f   :  { %v1923_v38 = vadd.f32 %v3293_v15, %v4787_v56  ;;  %v1914_v40 = vpop.f32.mrb[135].mxu0  ;;  %v2028_v41 = vmax.f32 %v1920_v22, 0.0 }
 0x350   :  { %v1915_v50 = vadd.f32 %v4787_v56, %v1914_v40  ;;  %v2026_v47 = vmax.f32 %v1912_v30, 0.0 }
 0x351   :  { %v2029_v27 = vmax.f32 %v1923_v38, 0.0 }
 0x352   :  { %v2027_v12 = vmax.f32 %v1915_v50, 0.0 }
 0x353   :  { %v2057_v54 = vpack.c.bf16 %v2029_v27, %v2028_v41 }
 0x354   :  { %v2056_v14 = vpack.c.bf16 %v2027_v12, %v2026_v47 }
 0x356   :  { %3338 = vmatprep.mubr.bf16.mxu1 %v2056_v14 }
 0x357   :  { %3339 = vmatmul.mubr.bf16.gmra.mrb[132].mxu1 %v2057_v54 }
 0x35c   :  { %v3296_v52 = vpop.f32.mrb[136].mxu0 }
 0x35d   :  { %v1936_v55 = vadd.f32 %v3296_v52, %v4787_v56  ;;  %v1927_v57 = vpop.f32.mrb[137].mxu0 }
 0x35e   :  { %v1928_v39 = vadd.f32 %v4787_v56, %v1927_v57  ;;  %v3297_v46 = vpop.f32.mrb[138].mxu0 }
 0x35f   :  { %v1939_v4 = vadd.f32 %v3297_v46, %v4787_v56  ;;  %v1930_v42 = vpop.f32.mrb[139].mxu0  ;;  %v2032_v8 = vmax.f32 %v1936_v55, 0.0 }
 0x360   :  { %v1931_v9 = vadd.f32 %v4787_v56, %v1930_v42  ;;  %v2030_v1 = vmax.f32 %v1928_v39, 0.0 }
 0x361   :  { %v2033_v45 = vmax.f32 %v1939_v4, 0.0 }
 0x362   :  { %v2031_v51 = vmax.f32 %v1931_v9, 0.0 }
 0x363   :  { %v2059_v58 = vpack.c.bf16 %v2033_v45, %v2032_v8 }
 0x364   :  { %v2058_v61 = vpack.c.bf16 %v2031_v51, %v2030_v1 }
 0x366   :  { %3342 = vmatprep.mubr.bf16.mxu1 %v2058_v61 }
 0x367   :  { %3343 = vmatmul.mubr.bf16.gmra.mrb[136].mxu1 %v2059_v58 }
 0x36c   :  { %v3300_v49 = vpop.f32.mrb[140].mxu0 }
 0x36d   :  { %v1952_v62 = vadd.f32 %v3300_v49, %v4787_v56  ;;  %v1943_v29 = vpop.f32.mrb[141].mxu0 }
 0x36e   :  { %v1944_v6 = vadd.f32 %v4787_v56, %v1943_v29  ;;  %v3301_v3 = vpop.f32.mrb[142].mxu0 }
 0x36f   :  { %v1955_v35 = vadd.f32 %v3301_v3, %v4787_v56  ;;  %v1946_v34 = vpop.f32.mrb[143].mxu0  ;;  %v2036_v31 = vmax.f32 %v1952_v62, 0.0 }
 0x370   :  { %v1947_v21 = vadd.f32 %v4787_v56, %v1946_v34  ;;  %v2034_v48 = vmax.f32 %v1944_v6, 0.0 }
 0x371   :  { %v2037_v60 = vmax.f32 %v1955_v35, 0.0 }
 0x372   :  { %v2035_v36 = vmax.f32 %v1947_v21, 0.0  ;;  %v4824_v21 = vld [vmem:[%s5134_s8] ss:$0 sm:$0xff]  ;;  %s3594_s8 = smov [#allocation2]  }
 0x373   :  { %v2061_v0 = vpack.c.bf16 %v2037_v60, %v2036_v31  ;;  %s2659_s16 = sshll.u32 %s3594_s8, 4  ;;  %s2660_s16 = int_to_ptr.vmem [resolvable:$true] %s2659_s16 }
 0x374   :  { %v2060_v53 = vpack.c.bf16 %v2035_v36, %v2034_v48  ;;  %s3570_s17 = scalar_lea.vmem %s2660_s16, 4096  ;;  %p3575_p1 = scmp.lt.s32.totalorder %s2660_s16, %s2660_s16 }
 0x375   :  { %p3571_p0 = scmp.ne.s32.totalorder %s2660_s16, %s3570_s17  ;;  %p3576_p2 = scmp.lt.s32.totalorder %s3570_s17, %s3570_s17 }
 0x376   :  { %3346 = vmatprep.mubr.bf16.mxu1 %v2060_v53 }
 0x377   :  { %3347 = vmatmul.mubr.bf16.gmra.mrb[140].mxu1 %v2061_v0  ;;  %p3577_p3 = por %p3576_p2, %p3575_p1 }
 0x379   :  { %p3578_p4 = pnand %p3577_p3, %p3571_p0 }
 0x37c   :  { %v3304_v5 = vpop.f32.mrb[144].mxu0 }
 0x37d   :  { %v1968_v16 = vadd.f32 %v3304_v5, %v4787_v56  ;;  %v1959_v17 = vpop.f32.mrb[145].mxu0 }
 0x37e   :  { %v1960_v24 = vadd.f32 %v4787_v56, %v1959_v17  ;;  %v3305_v28 = vpop.f32.mrb[146].mxu0 }
 0x37f   :  { %v1971_v19 = vadd.f32 %v3305_v28, %v4787_v56  ;;  %v1962_v32 = vpop.f32.mrb[147].mxu0  ;;  %v2040_v59 = vmax.f32 %v1968_v16, 0.0 }
 0x380   :  { %v1963_v13 = vadd.f32 %v4787_v56, %v1962_v32  ;;  %v2038_v10 = vmax.f32 %v1960_v24, 0.0 }
 0x381   :  { %v2041_v33 = vmax.f32 %v1971_v19, 0.0 }
 0x382   :  { %v2039_v26 = vmax.f32 %v1963_v13, 0.0 }
 0x383   :  { %v2063_v44 = vpack.c.bf16 %v2041_v33, %v2040_v59 }
 0x384   :  { %v2062_v18 = vpack.c.bf16 %v2039_v26, %v2038_v10 }
 0x386   :  { %3350 = vmatprep.mubr.bf16.mxu1 %v2062_v18 }
 0x387   :  { %3351 = vmatmul.mubr.bf16.gmra.mrb[144].mxu1 %v2063_v44 }
 0x38c   :  { %v3308_v20 = vpop.f32.mrb[148].mxu0 }
 0x38d   :  { %v1984_v63 = vadd.f32 %v3308_v20, %v4787_v56  ;;  %v1975_v2 = vpop.f32.mrb[149].mxu0 }
 0x38e   :  { %v1976_v43 = vadd.f32 %v4787_v56, %v1975_v2  ;;  %v3309_v23 = vpop.f32.mrb[150].mxu0 }
 0x38f   :  { %v1987_v25 = vadd.f32 %v3309_v23, %v4787_v56  ;;  %v1978_v11 = vpop.f32.mrb[151].mxu0  ;;  %v2044_v22 = vmax.f32 %v1984_v63, 0.0 }
 0x390   :  { %v1979_v7 = vadd.f32 %v4787_v56, %v1978_v11  ;;  %v2042_v30 = vmax.f32 %v1976_v43, 0.0 }
 0x391   :  { %v2045_v37 = vmax.f32 %v1987_v25, 0.0 }
 0x392   :  { %v2043_v15 = vmax.f32 %v1979_v7, 0.0 }
 0x393   :  { %v2065_v38 = vpack.c.bf16 %v2045_v37, %v2044_v22 }
 0x394   :  { %v2064_v40 = vpack.c.bf16 %v2043_v15, %v2042_v30 }
 0x396   :  { %3354 = vmatprep.mubr.bf16.mxu1 %v2064_v40 }
 0x397   :  { %3355 = vmatmul.mubr.bf16.gmra.mrb[148].mxu1 %v2065_v38 }
 0x39c   :  { %v3312_v50 = vpop.f32.mrb[152].mxu0 }
 0x39d   :  { %v2000_v41 = vadd.f32 %v3312_v50, %v4787_v56  ;;  %v1991_v27 = vpop.f32.mrb[153].mxu0 }
 0x39e   :  { %v1992_v47 = vadd.f32 %v4787_v56, %v1991_v27  ;;  %v3313_v12 = vpop.f32.mrb[154].mxu0 }
 0x39f   :  { %v2003_v54 = vadd.f32 %v3313_v12, %v4787_v56  ;;  %v1994_v14 = vpop.f32.mrb[155].mxu0  ;;  %v2048_v55 = vmax.f32 %v2000_v41, 0.0 }
 0x3a0   :  { %v1995_v52 = vadd.f32 %v4787_v56, %v1994_v14  ;;  %v2046_v39 = vmax.f32 %v1992_v47, 0.0 }
 0x3a1   :  { %v2049_v57 = vmax.f32 %v2003_v54, 0.0 }
 0x3a2   :  { %v2047_v46 = vmax.f32 %v1995_v52, 0.0 }
 0x3a3   :  { %v2067_v4 = vpack.c.bf16 %v2049_v57, %v2048_v55 }
 0x3a4   :  { %v2066_v42 = vpack.c.bf16 %v2047_v46, %v2046_v39 }
 0x3a6   :  { %3358 = vmatprep.mubr.bf16.mxu1 %v2066_v42 }
 0x3a7   :  { %3359 = vmatmul.mubr.bf16.gmra.mrb[152].mxu1 %v2067_v4 }
 0x3ac   :  { %v3316_v9 = vpop.f32.mrb[156].mxu0 }
 0x3ad   :  { %v2016_v8 = vadd.f32 %v3316_v9, %v4787_v56  ;;  %v2007_v45 = vpop.f32.mrb[157].mxu0 }
 0x3ae   :  { %v2008_v1 = vadd.f32 %v4787_v56, %v2007_v45  ;;  %v3317_v51 = vpop.f32.mrb[158].mxu0 }
 0x3af   :  { %v2019_v58 = vadd.f32 %v3317_v51, %v4787_v56  ;;  %v2010_v61 = vpop.f32.mrb[159].mxu0  ;;  %v2052_v62 = vmax.f32 %v2016_v8, 0.0 }
 0x3b0   :  { %v2011_v49 = vadd.f32 %v4787_v56, %v2010_v61  ;;  %v2050_v6 = vmax.f32 %v2008_v1, 0.0 }
 0x3b1   :  { %v2053_v29 = vmax.f32 %v2019_v58, 0.0 }
 0x3b2   :  { %v2051_v3 = vmax.f32 %v2011_v49, 0.0 }
 0x3b3   :  { %v2069_v35 = vpack.c.bf16 %v2053_v29, %v2052_v62 }
 0x3b4   :  { %v2068_v34 = vpack.c.bf16 %v2051_v3, %v2050_v6 }
 0x3b6   :  { %3362 = vmatprep.mubr.bf16.mxu1 %v2068_v34 }
 0x3b7   :  { %3363 = vmatmul.mubr.bf16.gmra.mrb[156].mxu1 %v2069_v35 }
 0x41a   :  { %v3336_v31 = vpop.f32.mrb[128].mxu1 }
 0x41b   :  { %v4827_v60 = vadd.f32 %v3336_v31, %v4824_v21  ;;  %v2175_v48 = vpop.f32.mrb[129].mxu1 }
 0x41c   :  { %v4830_v56 = vadd.f32 %v4824_v21, %v2175_v48  ;;  %v3337_v36 = vpop.f32.mrb[130].mxu1 }
 0x41d   :  { %2306 = vmax.xlane.f32.xlu1 %v4827_v60  ;;  %v2178_v0 = vpop.f32.mrb[131].mxu1  ;;  %v4835_v53 = vadd.f32 %v3337_v36, %v4824_v21 }
 0x41e   :  { %2302 = vmax.xlane.f32.xlu0 %v4830_v56  ;;  %v4838_v5 = vadd.f32 %v4824_v21, %v2178_v0 }
 0x421   :  { %2308 = vmax.xlane.f32.xlu1 %v4835_v53 }
 0x422   :  { %2304 = vmax.xlane.f32.xlu0 %v4838_v5 }
 0x42a   :  { %v3340_v16 = vpop.f32.mrb[132].mxu1 }
 0x42b   :  { %v4843_v17 = vadd.f32 %v3340_v16, %v4824_v21  ;;  %v2191_v24 = vpop.f32.mrb[133].mxu1 }
 0x42c   :  { %v3341_v28 = vpop.f32.mrb[134].mxu1  ;;  %v4850_v13 = vadd.f32 %v4824_v21, %v2191_v24 }
 0x42d   :  { %v4846_v19 = vadd.f32 %v3341_v28, %v4824_v21  ;;  %v2194_v32 = vpop.f32.mrb[135].mxu1  ;;  %2314 = vmax.xlane.f32.xlu0 %v4843_v17 }
 0x42e   :  { %v4854_v59 = vadd.f32 %v4824_v21, %v2194_v32 }
 0x42f   :  { %2316 = vmax.xlane.f32.xlu1 %v4846_v19 }
 0x431   :  { %2310 = vmax.xlane.f32.xlu0 %v4850_v13 }
 0x433   :  { %2312 = vmax.xlane.f32.xlu1 %v4854_v59 }
 0x43a   :  { %v3344_v33 = vpop.f32.mrb[136].mxu1 }
 0x43b   :  { %v4859_v10 = vadd.f32 %v3344_v33, %v4824_v21  ;;  %v2207_v26 = vpop.f32.mrb[137].mxu1 }
 0x43c   :  { %v3345_v44 = vpop.f32.mrb[138].mxu1  ;;  %v4866_v63 = vadd.f32 %v4824_v21, %v2207_v26 }
 0x43d   :  { %v4862_v18 = vadd.f32 %v3345_v44, %v4824_v21  ;;  %v2210_v20 = vpop.f32.mrb[139].mxu1  ;;  %2322 = vmax.xlane.f32.xlu0 %v4859_v10 }
 0x43e   :  { %v4870_v2 = vadd.f32 %v4824_v21, %v2210_v20 }
 0x43f   :  { %2324 = vmax.xlane.f32.xlu1 %v4862_v18 }
 0x441   :  { %2318 = vmax.xlane.f32.xlu0 %v4866_v63 }
 0x443   :  { %2320 = vmax.xlane.f32.xlu1 %v4870_v2 }
 0x44a   :  { %v3348_v43 = vpop.f32.mrb[140].mxu1 }
 0x44b   :  { %v4875_v23 = vadd.f32 %v3348_v43, %v4824_v21  ;;  %v2223_v25 = vpop.f32.mrb[141].mxu1 }
 0x44c   :  { %v3349_v11 = vpop.f32.mrb[142].mxu1  ;;  %v4882_v37 = vadd.f32 %v4824_v21, %v2223_v25 }
 0x44d   :  { %v4878_v7 = vadd.f32 %v3349_v11, %v4824_v21  ;;  %v2226_v22 = vpop.f32.mrb[143].mxu1  ;;  %2330 = vmax.xlane.f32.xlu0 %v4875_v23 }
 0x44e   :  { %v4886_v30 = vadd.f32 %v4824_v21, %v2226_v22 }
 0x44f   :  { %2332 = vmax.xlane.f32.xlu1 %v4878_v7 }
 0x451   :  { %2326 = vmax.xlane.f32.xlu0 %v4882_v37 }
 0x453   :  { %2328 = vmax.xlane.f32.xlu1 %v4886_v30 }
 0x45a   :  { %v3352_v15 = vpop.f32.mrb[144].mxu1 }
 0x45b   :  { %v4891_v38 = vadd.f32 %v3352_v15, %v4824_v21  ;;  %v2239_v40 = vpop.f32.mrb[145].mxu1 }
 0x45c   :  { %v3353_v50 = vpop.f32.mrb[146].mxu1  ;;  %v4898_v47 = vadd.f32 %v4824_v21, %v2239_v40 }
 0x45d   :  { %v4894_v41 = vadd.f32 %v3353_v50, %v4824_v21  ;;  %v2242_v27 = vpop.f32.mrb[147].mxu1  ;;  %2338 = vmax.xlane.f32.xlu0 %v4891_v38 }
 0x45e   :  { %v4902_v12 = vadd.f32 %v4824_v21, %v2242_v27 }
 0x45f   :  { %2340 = vmax.xlane.f32.xlu1 %v4894_v41 }
 0x461   :  { %2334 = vmax.xlane.f32.xlu0 %v4898_v47 }
 0x463   :  { %2336 = vmax.xlane.f32.xlu1 %v4902_v12 }
 0x46a   :  { %v3356_v54 = vpop.f32.mrb[148].mxu1 }
 0x46b   :  { %v4907_v14 = vadd.f32 %v3356_v54, %v4824_v21  ;;  %v2255_v52 = vpop.f32.mrb[149].mxu1 }
 0x46c   :  { %v3357_v55 = vpop.f32.mrb[150].mxu1  ;;  %v4914_v46 = vadd.f32 %v4824_v21, %v2255_v52 }
 0x46d   :  { %v4910_v57 = vadd.f32 %v3357_v55, %v4824_v21  ;;  %v2258_v39 = vpop.f32.mrb[151].mxu1  ;;  %2346 = vmax.xlane.f32.xlu0 %v4907_v14 }
 0x46e   :  { %v4918_v4 = vadd.f32 %v4824_v21, %v2258_v39 }
 0x46f   :  { %2348 = vmax.xlane.f32.xlu1 %v4910_v57 }
 0x471   :  { %2342 = vmax.xlane.f32.xlu0 %v4914_v46 }
 0x473   :  { %2344 = vmax.xlane.f32.xlu1 %v4918_v4 }
 0x47a   :  { %v3360_v42 = vpop.f32.mrb[152].mxu1 }
 0x47b   :  { %v4923_v9 = vadd.f32 %v3360_v42, %v4824_v21  ;;  %v2271_v8 = vpop.f32.mrb[153].mxu1 }
 0x47c   :  { %v3361_v45 = vpop.f32.mrb[154].mxu1  ;;  %v4930_v58 = vadd.f32 %v4824_v21, %v2271_v8 }
 0x47d   :  { %v4926_v1 = vadd.f32 %v3361_v45, %v4824_v21  ;;  %v2274_v51 = vpop.f32.mrb[155].mxu1  ;;  %2354 = vmax.xlane.f32.xlu0 %v4923_v9 }
 0x47e   :  { %v4934_v61 = vadd.f32 %v4824_v21, %v2274_v51 }
 0x47f   :  { %2356 = vmax.xlane.f32.xlu1 %v4926_v1 }
 0x481   :  { %2350 = vmax.xlane.f32.xlu0 %v4930_v58 }
 0x483   :  { %2352 = vmax.xlane.f32.xlu1 %v4934_v61 }
 0x48a   :  { %v3364_v49 = vpop.f32.mrb[156].mxu1 }
 0x48b   :  { %v2287_v62 = vpop.f32.mrb[157].mxu1  ;;  %v4946_v34 = vadd.f32 %v3364_v49, %v4824_v21 }
 0x48c   :  { %v4939_v29 = vadd.f32 %v4824_v21, %v2287_v62  ;;  %v3365_v6 = vpop.f32.mrb[158].mxu1 }
 0x48d   :  { %v2290_v3 = vpop.f32.mrb[159].mxu1  ;;  %v4950_v31 = vadd.f32 %v3365_v6, %v4824_v21 }
 0x48e   :  { %v4942_v35 = vadd.f32 %v4824_v21, %v2290_v3  ;;  %2358 = vmax.xlane.f32.xlu0 %v4939_v29 }
 0x490   :  { %2360 = vmax.xlane.f32.xlu1 %v4942_v35 }
 0x492   :  { %2362 = vmax.xlane.f32.xlu0 %v4946_v34 }
 0x494   :  { %2364 = vmax.xlane.f32.xlu1 %v4950_v31 }
 0x4aa   :  { %v2307_v48 = vpop.xlane.xlu1 %2306 }
 0x4ab   :  { %v4955_v36 = vsub.f32 %v4827_v60, %v2307_v48  ;;  %v2303_v0 = vpop.xlane.xlu0 %2302 }
 0x4ac   :  { %v4958_v16 = vsub.f32 %v4830_v56, %v2303_v0 }
 0x4ad   :  { %v2402_v24 = vmul.f32 1.442695, %v4955_v36 }
 0x4ae   :  { %v2398_v28 = vmul.f32 1.442695, %v4958_v16  ;;  %v2309_v32 = vpop.xlane.xlu1 %2308 }
 0x4af   :  { %3442 = vpow2.f32 %v2402_v24  ;;  %v4963_v21 = vsub.f32 %v4835_v53, %v2309_v32  ;;  %v2305_v33 = vpop.xlane.xlu0 %2304 }
 0x4b0   :  { %v4966_v26 = vsub.f32 %v4838_v5, %v2305_v33  ;;  %3444 = vpow2.f32 %v2398_v28 }
 0x4b1   :  { %v2404_v60 = vmul.f32 1.442695, %v4963_v21 }
 0x4b2   :  { %v2400_v56 = vmul.f32 1.442695, %v4966_v26 }
 0x4b3   :  { %3446 = vpow2.f32 %v2404_v60 }
 0x4b4   :  { %3448 = vpow2.f32 %v2400_v56 }
 0x4b9   :  { %v3443_v44 = vpop.eup %3442 }
 0x4ba   :  { %2466 = vadd.xlane.f32.xlu0 %v3443_v44  ;;  %v2315_v20 = vpop.xlane.xlu0 %2314  ;;  %v3445_v25 = vpop.eup %3444 }
 0x4bb   :  { %v4971_v43 = vsub.f32 %v4843_v17, %v2315_v20 }
 0x4bc   :  { %v2317_v53 = vpop.xlane.xlu1 %2316 }
 0x4bd   :  { %v3447_v11 = vpop.eup %3446  ;;  %v2410_v22 = vmul.f32 1.442695, %v4971_v43  ;;  %v4975_v5 = vsub.f32 %v4846_v19, %v2317_v53 }
 0x4be   :  { %2468 = vadd.xlane.f32.xlu1 %v3447_v11  ;;  %2462 = vadd.xlane.f32.xlu0 %v3445_v25  ;;  %v2311_v15 = vpop.xlane.xlu0 %2310  ;;  %v3449_v17 = vpop.eup %3448 }
 0x4bf   :  { %3450 = vpow2.f32 %v2410_v22  ;;  %v2412_v40 = vmul.f32 1.442695, %v4975_v5  ;;  %v4979_v50 = vsub.f32 %v4850_v13, %v2311_v15 }
 0x4c0   :  { %v2313_v27 = vpop.xlane.xlu1 %2312 }
 0x4c1   :  { %3452 = vpow2.f32 %v2412_v40  ;;  %v2406_v54 = vmul.f32 1.442695, %v4979_v50  ;;  %v4983_v52 = vsub.f32 %v4854_v59, %v2313_v27 }
 0x4c2   :  { %2464 = vadd.xlane.f32.xlu1 %v3449_v17 }
 0x4c3   :  { %3454 = vpow2.f32 %v2406_v54  ;;  %v2408_v19 = vmul.f32 1.442695, %v4983_v52 }
 0x4c5   :  { %3456 = vpow2.f32 %v2408_v19 }
 0x4c9   :  { %v3451_v55 = vpop.eup %3450 }
 0x4ca   :  { %2474 = vadd.xlane.f32.xlu0 %v3451_v55  ;;  %v2323_v39 = vpop.xlane.xlu0 %2322 }
 0x4cb   :  { %v3453_v42 = vpop.eup %3452  ;;  %v4987_v13 = vsub.f32 %v4859_v10, %v2323_v39 }
 0x4cc   :  { %v2325_v8 = vpop.xlane.xlu1 %2324  ;;  %2476 = vadd.xlane.f32.xlu1 %v3453_v42 }
 0x4cd   :  { %v3455_v45 = vpop.eup %3454  ;;  %v2418_v51 = vmul.f32 1.442695, %v4987_v13  ;;  %v4991_v59 = vsub.f32 %v4862_v18, %v2325_v8 }
 0x4ce   :  { %2470 = vadd.xlane.f32.xlu0 %v3455_v45  ;;  %v2319_v49 = vpop.xlane.xlu0 %2318 }
 0x4cf   :  { %v3457_v62 = vpop.eup %3456  ;;  %3458 = vpow2.f32 %v2418_v51  ;;  %v2420_v6 = vmul.f32 1.442695, %v4991_v59  ;;  %v4995_v3 = vsub.f32 %v4866_v63, %v2319_v49 }
 0x4d0   :  { %v2321_v48 = vpop.xlane.xlu1 %2320  ;;  %2472 = vadd.xlane.f32.xlu1 %v3457_v62 }
 0x4d1   :  { %3460 = vpow2.f32 %v2420_v6  ;;  %v2414_v10 = vmul.f32 1.442695, %v4995_v3  ;;  %v4999_v0 = vsub.f32 %v4870_v2, %v2321_v48 }
 0x4d3   :  { %3462 = vpow2.f32 %v2414_v10  ;;  %v2416_v18 = vmul.f32 1.442695, %v4999_v0 }
 0x4d5   :  { %3464 = vpow2.f32 %v2416_v18 }
 0x4d9   :  { %v3459_v24 = vpop.eup %3458 }
 0x4da   :  { %2482 = vadd.xlane.f32.xlu0 %v3459_v24  ;;  %v2331_v28 = vpop.xlane.xlu0 %2330 }
 0x4db   :  { %v3461_v32 = vpop.eup %3460  ;;  %v5003_v33 = vsub.f32 %v4875_v23, %v2331_v28 }
 0x4dc   :  { %v2333_v63 = vpop.xlane.xlu1 %2332  ;;  %2484 = vadd.xlane.f32.xlu1 %v3461_v32 }
 0x4dd   :  { %v3463_v60 = vpop.eup %3462  ;;  %v2426_v56 = vmul.f32 1.442695, %v5003_v33  ;;  %v5007_v44 = vsub.f32 %v4878_v7, %v2333_v63 }
 0x4de   :  { %2478 = vadd.xlane.f32.xlu0 %v3463_v60  ;;  %v2327_v2 = vpop.xlane.xlu0 %2326 }
 0x4df   :  { %v3465_v20 = vpop.eup %3464  ;;  %3466 = vpow2.f32 %v2426_v56  ;;  %v2428_v25 = vmul.f32 1.442695, %v5007_v44  ;;  %v5011_v53 = vsub.f32 %v4882_v37, %v2327_v2 }
 0x4e0   :  { %v2329_v11 = vpop.xlane.xlu1 %2328  ;;  %2480 = vadd.xlane.f32.xlu1 %v3465_v20 }
 0x4e1   :  { %3468 = vpow2.f32 %v2428_v25  ;;  %v2422_v23 = vmul.f32 1.442695, %v5011_v53  ;;  %v5015_v22 = vsub.f32 %v4886_v30, %v2329_v11 }
 0x4e3   :  { %3470 = vpow2.f32 %v2422_v23  ;;  %v2424_v7 = vmul.f32 1.442695, %v5015_v22 }
 0x4e5   :  { %3472 = vpow2.f32 %v2424_v7 }
 0x4e9   :  { %v3467_v15 = vpop.eup %3466 }
 0x4ea   :  { %2490 = vadd.xlane.f32.xlu0 %v3467_v15  ;;  %v2339_v40 = vpop.xlane.xlu0 %2338 }
 0x4eb   :  { %v3469_v27 = vpop.eup %3468  ;;  %v5019_v17 = vsub.f32 %v4891_v38, %v2339_v40 }
 0x4ec   :  { %v2341_v37 = vpop.xlane.xlu1 %2340  ;;  %2492 = vadd.xlane.f32.xlu1 %v3469_v27 }
 0x4ed   :  { %v3471_v54 = vpop.eup %3470  ;;  %v2434_v19 = vmul.f32 1.442695, %v5019_v17  ;;  %v5023_v55 = vsub.f32 %v4894_v41, %v2341_v37 }
 0x4ee   :  { %2486 = vadd.xlane.f32.xlu0 %v3471_v54  ;;  %v2335_v30 = vpop.xlane.xlu0 %2334 }
 0x4ef   :  { %v3473_v39 = vpop.eup %3472  ;;  %3474 = vpow2.f32 %v2434_v19  ;;  %v2436_v42 = vmul.f32 1.442695, %v5023_v55  ;;  %v5027_v8 = vsub.f32 %v4898_v47, %v2335_v30 }
 0x4f0   :  { %v2337_v45 = vpop.xlane.xlu1 %2336  ;;  %2488 = vadd.xlane.f32.xlu1 %v3473_v39 }
 0x4f1   :  { %3476 = vpow2.f32 %v2436_v42  ;;  %v2430_v38 = vmul.f32 1.442695, %v5027_v8  ;;  %v5031_v51 = vsub.f32 %v4902_v12, %v2337_v45 }
 0x4f3   :  { %3478 = vpow2.f32 %v2430_v38  ;;  %v2432_v41 = vmul.f32 1.442695, %v5031_v51 }
 0x4f5   :  { %3480 = vpow2.f32 %v2432_v41 }
 0x4f9   :  { %v3475_v49 = vpop.eup %3474 }
 0x4fa   :  { %2498 = vadd.xlane.f32.xlu0 %v3475_v49  ;;  %v2347_v62 = vpop.xlane.xlu0 %2346 }
 0x4fb   :  { %v3477_v6 = vpop.eup %3476  ;;  %v5035_v48 = vsub.f32 %v4907_v14, %v2347_v62 }
 0x4fc   :  { %v2349_v47 = vpop.xlane.xlu1 %2348  ;;  %2500 = vadd.xlane.f32.xlu1 %v3477_v6 }
 0x4fd   :  { %v3479_v10 = vpop.eup %3478  ;;  %v2442_v18 = vmul.f32 1.442695, %v5035_v48  ;;  %v5039_v24 = vsub.f32 %v4910_v57, %v2349_v47 }
 0x4fe   :  { %2494 = vadd.xlane.f32.xlu0 %v3479_v10  ;;  %v2343_v12 = vpop.xlane.xlu0 %2342 }
 0x4ff   :  { %v3481_v28 = vpop.eup %3480  ;;  %3482 = vpow2.f32 %v2442_v18  ;;  %v2444_v32 = vmul.f32 1.442695, %v5039_v24  ;;  %v5043_v63 = vsub.f32 %v4914_v46, %v2343_v12 }
 0x500   :  { %v2345_v60 = vpop.xlane.xlu1 %2344  ;;  %2496 = vadd.xlane.f32.xlu1 %v3481_v28 }
 0x501   :  { %3484 = vpow2.f32 %v2444_v32  ;;  %v2438_v14 = vmul.f32 1.442695, %v5043_v63  ;;  %v5047_v56 = vsub.f32 %v4918_v4, %v2345_v60 }
 0x503   :  { %3486 = vpow2.f32 %v2438_v14  ;;  %v2440_v57 = vmul.f32 1.442695, %v5047_v56 }
 0x505   :  { %3488 = vpow2.f32 %v2440_v57 }
 0x509   :  { %v3483_v2 = vpop.eup %3482 }
 0x50a   :  { %2506 = vadd.xlane.f32.xlu0 %v3483_v2  ;;  %v2355_v20 = vpop.xlane.xlu0 %2354 }
 0x50b   :  { %v3485_v25 = vpop.eup %3484  ;;  %v5051_v11 = vsub.f32 %v4923_v9, %v2355_v20 }
 0x50c   :  { %v2357_v46 = vpop.xlane.xlu1 %2356  ;;  %2508 = vadd.xlane.f32.xlu1 %v3485_v25 }
 0x50d   :  { %v3487_v23 = vpop.eup %3486  ;;  %v2450_v7 = vmul.f32 1.442695, %v5051_v11  ;;  %v5055_v15 = vsub.f32 %v4926_v1, %v2357_v46 }
 0x50e   :  { %2502 = vadd.xlane.f32.xlu0 %v3487_v23  ;;  %v2351_v4 = vpop.xlane.xlu0 %2350 }
 0x50f   :  { %v3489_v40 = vpop.eup %3488  ;;  %3490 = vpow2.f32 %v2450_v7  ;;  %v2452_v27 = vmul.f32 1.442695, %v5055_v15  ;;  %v5059_v37 = vsub.f32 %v4930_v58, %v2351_v4 }
 0x510   :  { %v2353_v54 = vpop.xlane.xlu1 %2352  ;;  %2504 = vadd.xlane.f32.xlu1 %v3489_v40 }
 0x511   :  { %3492 = vpow2.f32 %v2452_v27  ;;  %v2446_v9 = vmul.f32 1.442695, %v5059_v37  ;;  %v5063_v19 = vsub.f32 %v4934_v61, %v2353_v54 }
 0x513   :  { %3494 = vpow2.f32 %v2446_v9  ;;  %v2448_v1 = vmul.f32 1.442695, %v5063_v19 }
 0x515   :  { %3496 = vpow2.f32 %v2448_v1 }
 0x519   :  { %v3491_v30 = vpop.eup %3490 }
 0x51a   :  { %2514 = vadd.xlane.f32.xlu0 %v3491_v30 }
 0x51b   :  { %v3493_v39 = vpop.eup %3492  ;;  %v2359_v42 = vpop.xlane.xlu0 %2358 }
 0x51c   :  { %v5067_v45 = vsub.f32 %v4939_v29, %v2359_v42  ;;  %2516 = vadd.xlane.f32.xlu1 %v3493_v39 }
 0x51d   :  { %v3495_v58 = vpop.eup %3494  ;;  %v2361_v38 = vpop.xlane.xlu1 %2360 }
 0x51e   :  { %v2454_v41 = vmul.f32 1.442695, %v5067_v45  ;;  %v5071_v49 = vsub.f32 %v4942_v35, %v2361_v38  ;;  %2510 = vadd.xlane.f32.xlu0 %v3495_v58 }
 0x51f   :  { %v3497_v61 = vpop.eup %3496  ;;  %v2363_v62 = vpop.xlane.xlu0 %2362 }
 0x520   :  { %3498 = vpow2.f32 %v2454_v41  ;;  %v2456_v6 = vmul.f32 1.442695, %v5071_v49  ;;  %v5075_v47 = vsub.f32 %v4946_v34, %v2363_v62  ;;  %2512 = vadd.xlane.f32.xlu1 %v3497_v61 }
 0x521   :  { %v2365_v29 = vpop.xlane.xlu1 %2364 }
 0x522   :  { %3500 = vpow2.f32 %v2456_v6  ;;  %v2458_v10 = vmul.f32 1.442695, %v5075_v47  ;;  %v5079_v18 = vsub.f32 %v4950_v31, %v2365_v29 }
 0x524   :  { %3502 = vpow2.f32 %v2458_v10  ;;  %v2460_v35 = vmul.f32 1.442695, %v5079_v18 }
 0x526   :  { %3504 = vpow2.f32 %v2460_v35 }
 0x52a   :  { %v3499_v12 = vpop.eup %3498 }
 0x52b   :  { %2518 = vadd.xlane.f32.xlu0 %v3499_v12 }
 0x52c   :  { %v3501_v28 = vpop.eup %3500 }
 0x52d   :  { %2520 = vadd.xlane.f32.xlu1 %v3501_v28 }
 0x52e   :  { %v3503_v32 = vpop.eup %3502 }
 0x52f   :  { %2522 = vadd.xlane.f32.xlu0 %v3503_v32 }
 0x530   :  { %v3505_v34 = vpop.eup %3504 }
 0x531   :  { %2524 = vadd.xlane.f32.xlu1 %v3505_v34 }
 0x547   :  { %v2467_v60 = vpop.xlane.xlu0 %2466 }
 0x548   :  { %3506 = vlog2.f32 %v2467_v60 }
 0x54b   :  { %v2469_v14 = vpop.xlane.xlu1 %2468  ;;  %v2463_v57 = vpop.xlane.xlu0 %2462 }
 0x54c   :  { %3508 = vlog2.f32 %v2469_v14 }
 0x54d   :  { %3510 = vlog2.f32 %v2463_v57 }
 0x54f   :  { %v2465_v31 = vpop.xlane.xlu1 %2464 }
 0x550   :  { %3512 = vlog2.f32 %v2465_v31 }
 0x552   :  { %v3507_v2 = vpop.eup %3506 }
 0x553   :  { %v2531_v20 = vmul.f32 0.6931472, %v3507_v2 }
 0x555   :  { %v2592_v25 = vsub.f32 %v4955_v36, %v2531_v20 }
 0x556   :  { %v3509_v46 = vpop.eup %3508 }
 0x557   :  { %v3511_v23 = vpop.eup %3510  ;;  %2624 = vst [vmem:[#allocation2 + $0x10] sm:$0xff] %v2592_v25  ;;  %v2533_v7 = vmul.f32 0.6931472, %v3509_v46  ;;  %v2475_v4 = vpop.xlane.xlu0 %2474 }
 0x558   :  { %v2527_v40 = vmul.f32 0.6931472, %v3511_v23  ;;  %3514 = vlog2.f32 %v2475_v4 }
 0x559   :  { %v2593_v27 = vsub.f32 %v4963_v21, %v2533_v7  ;;  %v2477_v54 = vpop.xlane.xlu1 %2476 }
 0x55a   :  { %v3513_v9 = vpop.eup %3512  ;;  %v2590_v1 = vsub.f32 %v4958_v16, %v2527_v40  ;;  %3516 = vlog2.f32 %v2477_v54 }
 0x55b   :  { %2625 = vst [vmem:[#allocation2 + $0x18] sm:$0xff] %v2593_v27  ;;  %v2529_v30 = vmul.f32 0.6931472, %v3513_v9  ;;  %v2471_v39 = vpop.xlane.xlu0 %2470 }
 0x55c   :  { %2622 = vst [vmem:[#allocation2] sm:$0xff] %v2590_v1  ;;  %3518 = vlog2.f32 %v2471_v39 }
 0x55d   :  { %v2591_v36 = vsub.f32 %v4966_v26, %v2529_v30  ;;  %v2473_v42 = vpop.xlane.xlu1 %2472 }
 0x55e   :  { %3520 = vlog2.f32 %v2473_v42 }
 0x55f   :  { %2623 = vst [vmem:[#allocation2 + $0x8] sm:$0xff] %v2591_v36 }
 0x562   :  { %v3515_v58 = vpop.eup %3514 }
 0x563   :  { %v2539_v38 = vmul.f32 0.6931472, %v3515_v58 }
 0x564   :  { %v3517_v41 = vpop.eup %3516 }
 0x565   :  { %v2596_v21 = vsub.f32 %v4971_v43, %v2539_v38  ;;  %v2541_v61 = vmul.f32 0.6931472, %v3517_v41 }
 0x566   :  { %v3519_v62 = vpop.eup %3518 }
 0x567   :  { %2628 = vst [vmem:[#allocation2 + $0x30] sm:$0xff] %v2596_v21  ;;  %v2597_v16 = vsub.f32 %v4975_v5, %v2541_v61  ;;  %v2535_v6 = vmul.f32 0.6931472, %v3519_v62  ;;  %v2483_v29 = vpop.xlane.xlu0 %2482 }
 0x568   :  { %v3521_v10 = vpop.eup %3520  ;;  %3522 = vlog2.f32 %v2483_v29 }
 0x569   :  { %2629 = vst [vmem:[#allocation2 + $0x38] sm:$0xff] %v2597_v16  ;;  %v2594_v26 = vsub.f32 %v4979_v50, %v2535_v6  ;;  %v2537_v35 = vmul.f32 0.6931472, %v3521_v10  ;;  %v2485_v12 = vpop.xlane.xlu1 %2484 }
 0x56a   :  { %3524 = vlog2.f32 %v2485_v12 }
 0x56b   :  { %2626 = vst [vmem:[#allocation2 + $0x20] sm:$0xff] %v2594_v26  ;;  %v2595_v28 = vsub.f32 %v4983_v52, %v2537_v35  ;;  %v2479_v32 = vpop.xlane.xlu0 %2478 }
 0x56c   :  { %3526 = vlog2.f32 %v2479_v32 }
 0x56d   :  { %2627 = vst [vmem:[#allocation2 + $0x28] sm:$0xff] %v2595_v28  ;;  %v2481_v43 = vpop.xlane.xlu1 %2480 }
 0x56e   :  { %3528 = vlog2.f32 %v2481_v43 }
 0x572   :  { %v3523_v34 = vpop.eup %3522 }
 0x573   :  { %v2547_v5 = vmul.f32 0.6931472, %v3523_v34 }
 0x574   :  { %v3525_v60 = vpop.eup %3524 }
 0x575   :  { %v2600_v14 = vsub.f32 %v4987_v13, %v2547_v5  ;;  %v2549_v57 = vmul.f32 0.6931472, %v3525_v60 }
 0x576   :  { %v3527_v31 = vpop.eup %3526 }
 0x577   :  { %2632 = vst [vmem:[#allocation2 + $0x50] sm:$0xff] %v2600_v14  ;;  %v2601_v50 = vsub.f32 %v4991_v59, %v2549_v57  ;;  %v2543_v2 = vmul.f32 0.6931472, %v3527_v31  ;;  %v2491_v20 = vpop.xlane.xlu0 %2490 }
 0x578   :  { %v3529_v25 = vpop.eup %3528  ;;  %3530 = vlog2.f32 %v2491_v20 }
 0x579   :  { %2633 = vst [vmem:[#allocation2 + $0x58] sm:$0xff] %v2601_v50  ;;  %v2598_v52 = vsub.f32 %v4995_v3, %v2543_v2  ;;  %v2545_v46 = vmul.f32 0.6931472, %v3529_v25  ;;  %v2493_v23 = vpop.xlane.xlu1 %2492 }
 0x57a   :  { %3532 = vlog2.f32 %v2493_v23 }
 0x57b   :  { %2630 = vst [vmem:[#allocation2 + $0x40] sm:$0xff] %v2598_v52  ;;  %v2599_v7 = vsub.f32 %v4999_v0, %v2545_v46  ;;  %v2487_v4 = vpop.xlane.xlu0 %2486 }
 0x57c   :  { %3534 = vlog2.f32 %v2487_v4 }
 0x57d   :  { %2631 = vst [vmem:[#allocation2 + $0x48] sm:$0xff] %v2599_v7  ;;  %v2489_v13 = vpop.xlane.xlu1 %2488 }
 0x57e   :  { %3536 = vlog2.f32 %v2489_v13 }
 0x582   :  { %v3531_v40 = vpop.eup %3530 }
 0x583   :  { %v2555_v59 = vmul.f32 0.6931472, %v3531_v40 }
 0x584   :  { %v3533_v27 = vpop.eup %3532 }
 0x585   :  { %v2604_v54 = vsub.f32 %v5003_v33, %v2555_v59  ;;  %v2557_v9 = vmul.f32 0.6931472, %v3533_v27 }
 0x586   :  { %v3535_v1 = vpop.eup %3534 }
 0x587   :  { %2636 = vst [vmem:[#allocation2 + $0x70] sm:$0xff] %v2604_v54  ;;  %v2605_v3 = vsub.f32 %v5007_v44, %v2557_v9  ;;  %v2551_v30 = vmul.f32 0.6931472, %v3535_v1  ;;  %v2499_v39 = vpop.xlane.xlu0 %2498 }
 0x588   :  { %v3537_v36 = vpop.eup %3536  ;;  %3538 = vlog2.f32 %v2499_v39 }
 0x589   :  { %2637 = vst [vmem:[#allocation2 + $0x78] sm:$0xff] %v2605_v3  ;;  %v2602_v0 = vsub.f32 %v5011_v53, %v2551_v30  ;;  %v2553_v42 = vmul.f32 0.6931472, %v3537_v36  ;;  %v2501_v58 = vpop.xlane.xlu1 %2500 }
 0x58a   :  { %3540 = vlog2.f32 %v2501_v58 }
 0x58b   :  { %2634 = vst [vmem:[#allocation2 + $0x60] sm:$0xff] %v2602_v0  ;;  %v2603_v38 = vsub.f32 %v5015_v22, %v2553_v42  ;;  %v2495_v41 = vpop.xlane.xlu0 %2494 }
 0x58c   :  { %3542 = vlog2.f32 %v2495_v41 }
 0x58d   :  { %2635 = vst [vmem:[#allocation2 + $0x68] sm:$0xff] %v2603_v38  ;;  %v2497_v33 = vpop.xlane.xlu1 %2496 }
 0x58e   :  { %3544 = vlog2.f32 %v2497_v33 }
 0x592   :  { %v3539_v21 = vpop.eup %3538 }
 0x593   :  { %v2563_v44 = vmul.f32 0.6931472, %v3539_v21 }
 0x594   :  { %v3541_v61 = vpop.eup %3540 }
 0x595   :  { %v2608_v62 = vsub.f32 %v5019_v17, %v2563_v44  ;;  %v2565_v16 = vmul.f32 0.6931472, %v3541_v61 }
 0x596   :  { %v3543_v6 = vpop.eup %3542 }
 0x597   :  { %2640 = vst [vmem:[#allocation2 + $0x90] sm:$0xff] %v2608_v62  ;;  %v2609_v53 = vsub.f32 %v5023_v55, %v2565_v16  ;;  %v2559_v29 = vmul.f32 0.6931472, %v3543_v6  ;;  %v2507_v10 = vpop.xlane.xlu0 %2506 }
 0x598   :  { %v3545_v26 = vpop.eup %3544  ;;  %3546 = vlog2.f32 %v2507_v10 }
 0x599   :  { %2641 = vst [vmem:[#allocation2 + $0x98] sm:$0xff] %v2609_v53  ;;  %v2606_v22 = vsub.f32 %v5027_v8, %v2559_v29  ;;  %v2561_v35 = vmul.f32 0.6931472, %v3545_v26  ;;  %v2509_v12 = vpop.xlane.xlu1 %2508 }
 0x59a   :  { %3548 = vlog2.f32 %v2509_v12 }
 0x59b   :  { %2638 = vst [vmem:[#allocation2 + $0x80] sm:$0xff] %v2606_v22  ;;  %v2607_v28 = vsub.f32 %v5031_v51, %v2561_v35  ;;  %v2503_v32 = vpop.xlane.xlu0 %2502 }
 0x59c   :  { %3550 = vlog2.f32 %v2503_v32 }
 0x59d   :  { %2639 = vst [vmem:[#allocation2 + $0x88] sm:$0xff] %v2607_v28  ;;  %v2505_v17 = vpop.xlane.xlu1 %2504 }
 0x59e   :  { %3552 = vlog2.f32 %v2505_v17 }
 0x5a2   :  { %v3547_v43 = vpop.eup %3546 }
 0x5a3   :  { %v2571_v55 = vmul.f32 0.6931472, %v3547_v43 }
 0x5a4   :  { %v3549_v34 = vpop.eup %3548 }
 0x5a5   :  { %v2612_v5 = vsub.f32 %v5035_v48, %v2571_v55  ;;  %v2573_v60 = vmul.f32 0.6931472, %v3549_v34 }
 0x5a6   :  { %v3551_v14 = vpop.eup %3550 }
 0x5a7   :  { %2644 = vst [vmem:[#allocation2 + $0xb0] sm:$0xff] %v2612_v5  ;;  %v2613_v8 = vsub.f32 %v5039_v24, %v2573_v60  ;;  %v2567_v57 = vmul.f32 0.6931472, %v3551_v14  ;;  %v2515_v31 = vpop.xlane.xlu0 %2514 }
 0x5a8   :  { %v3553_v50 = vpop.eup %3552  ;;  %3554 = vlog2.f32 %v2515_v31 }
 0x5a9   :  { %2645 = vst [vmem:[#allocation2 + $0xb8] sm:$0xff] %v2613_v8  ;;  %v2610_v51 = vsub.f32 %v5043_v63, %v2567_v57  ;;  %v2569_v2 = vmul.f32 0.6931472, %v3553_v50  ;;  %v2517_v20 = vpop.xlane.xlu1 %2516 }
 0x5aa   :  { %3556 = vlog2.f32 %v2517_v20 }
 0x5ab   :  { %2642 = vst [vmem:[#allocation2 + $0xa0] sm:$0xff] %v2610_v51  ;;  %v2611_v25 = vsub.f32 %v5047_v56, %v2569_v2  ;;  %v2511_v52 = vpop.xlane.xlu0 %2510 }
 0x5ac   :  { %3558 = vlog2.f32 %v2511_v52 }
 0x5ad   :  { %2643 = vst [vmem:[#allocation2 + $0xa8] sm:$0xff] %v2611_v25  ;;  %v2513_v48 = vpop.xlane.xlu1 %2512 }
 0x5ae   :  { %3560 = vlog2.f32 %v2513_v48 }
 0x5b2   :  { %v3555_v46 = vpop.eup %3554 }
 0x5b3   :  { %v2579_v24 = vmul.f32 0.6931472, %v3555_v46 }
 0x5b4   :  { %v3557_v23 = vpop.eup %3556 }
 0x5b5   :  { %v2616_v7 = vsub.f32 %v5051_v11, %v2579_v24  ;;  %v2581_v4 = vmul.f32 0.6931472, %v3557_v23 }
 0x5b6   :  { %v3559_v13 = vpop.eup %3558 }
 0x5b7   :  { %2648 = vst [vmem:[#allocation2 + $0xd0] sm:$0xff] %v2616_v7  ;;  %v2617_v63 = vsub.f32 %v5055_v15, %v2581_v4  ;;  %v2575_v40 = vmul.f32 0.6931472, %v3559_v13 }
 0x5b8   :  { %v3561_v59 = vpop.eup %3560  ;;  %v2519_v27 = vpop.xlane.xlu0 %2518 }
 0x5b9   :  { %2649 = vst [vmem:[#allocation2 + $0xd8] sm:$0xff] %v2617_v63  ;;  %v2614_v56 = vsub.f32 %v5059_v37, %v2575_v40  ;;  %v2577_v54 = vmul.f32 0.6931472, %v3561_v59  ;;  %3562 = vlog2.f32 %v2519_v27 }
 0x5ba   :  { %v2521_v9 = vpop.xlane.xlu1 %2520 }
 0x5bb   :  { %2646 = vst [vmem:[#allocation2 + $0xc0] sm:$0xff] %v2614_v56  ;;  %v2615_v1 = vsub.f32 %v5063_v19, %v2577_v54  ;;  %3564 = vlog2.f32 %v2521_v9 }
 0x5bc   :  { %v2523_v3 = vpop.xlane.xlu0 %2522 }
 0x5bd   :  { %2647 = vst [vmem:[#allocation2 + $0xc8] sm:$0xff] %v2615_v1  ;;  %3566 = vlog2.f32 %v2523_v3 }
 0x5be   :  { %v2525_v11 = vpop.xlane.xlu1 %2524 }
 0x5bf   :  { %3568 = vlog2.f32 %v2525_v11 }
 0x5c3   :  { %v3563_v30 = vpop.eup %3562 }
 0x5c4   :  { %v2583_v15 = vmul.f32 0.6931472, %v3563_v30 }
 0x5c5   :  { %v3565_v39 = vpop.eup %3564 }
 0x5c6   :  { %v2618_v36 = vsub.f32 %v5067_v45, %v2583_v15  ;;  %v2585_v0 = vmul.f32 0.6931472, %v3565_v39 }
 0x5c7   :  { %v3567_v42 = vpop.eup %3566 }
 0x5c8   :  { %2650 = vst [vmem:[#allocation2 + $0xe0] sm:$0xff] %v2618_v36  ;;  %v2619_v37 = vsub.f32 %v5071_v49, %v2585_v0  ;;  %v2587_v58 = vmul.f32 0.6931472, %v3567_v42 }
 0x5c9   :  { %v3569_v38 = vpop.eup %3568 }
 0x5ca   :  { %2651 = vst [vmem:[#allocation2 + $0xe8] sm:$0xff] %v2619_v37  ;;  %v2620_v19 = vsub.f32 %v5075_v47, %v2587_v58  ;;  %v2589_v41 = vmul.f32 0.6931472, %v3569_v38 }
 0x5cc   :  { %2652 = vst [vmem:[#allocation2 + $0xf0] sm:$0xff] %v2620_v19  ;;  %v2621_v33 = vsub.f32 %v5079_v18, %v2589_v41 }
 0x5ce   :  { %2653 = vst [vmem:[#allocation2 + $0xf8] sm:$0xff] %v2621_v33 }
 0x5cf   :  { %3581 = shalt.err (!%p3578_p4)
}
 0x5d0   :  { %s3582_s19 = scalar_lea.hbm %s5135_s9, 4096 }
 0x5d1   :  { %p3583_p5 = scmp.ne.s32.totalorder %s5135_s9, %s3582_s19  ;;  %p3586_p6 = scmp.lt.u32.totalorder %s3582_s19, %s5135_s9 }
 0x5d3   :  { %p3588_p7 = pnand %p3586_p6, %p3583_p5 }
 0x5d5   :  { %3591 = shalt.err (!%p3588_p7)
}
 0x5d6   :  { %s3595_s22 = smov 128   ;;  %s3596_s23 = smov 8  }
 0x5d7   :  { %2665 = dma.vmem_to_hbm [thread:$0]  %s2660_s16, 4096, %s5135_s9, [#allocation3], %s3595_s22, %s3595_s22, %s3596_s23  }
 0x5d8   :  { %3592 = dma.done.wait [#allocation3], 4096  }
 0x5d9   :  { %3593 = vsyncadd [#allocation3], 4294963200 }
 0x5da   :  { %2669 = vsyncpa [#allocation3], 1 }

</bundles_post_ra>
